<compile_context>
chip_gen: v6e
topology: v6e:2x2x1
jax: 0.10.0
libtpu: 0.0.40
codegen_flags: <defaults>
</compile_context>

<pallas_src>
import functools

import numpy as np
import jax
import jax.numpy as jnp
from jax.experimental import pallas as pl
from jax.experimental.pallas import tpu as pltpu


# -----------------------------------------------------------------------------
# helpers
# -----------------------------------------------------------------------------
def _conv_out(size: int, k: int, s: int) -> int:
    return (size - k) // s + 1


def _round_up(x: int, m: int) -> int:
    return ((x + m - 1) // m) * m


# -----------------------------------------------------------------------------
# fused encoder kernel (one grid step = one batch block of `bt` samples)
# -----------------------------------------------------------------------------
def _encoder_kernel(*refs, meta):
    """refs = (patches1_ref, w1, b1, w2, b2, ..., wL, bL, out_ref).

    Activations never leave VMEM.  Each layer is a single GEMM:
      * layer 1 consumes the wrapper-built im2col patches (rows = (pos, n)),
      * later conv layers / the flatten+Linear build their patches from
        static sublane-aligned slices of the previous activation, taps
        concatenated along lanes -> one fused (rows, k*k*Cin) @ (k*k*Cin, Cout).
    """
    bt = meta["bt"]
    out_ref = refs[-1]
    x = refs[0][0]                                  # (P1*bt, K1)  rows = (pos, n)
    ri = 1
    for layer in meta["layers"]:
        w_ref, b_ref = refs[ri], refs[ri + 1]
        ri += 2
        gather = layer["gather"]
        if gather is not None:
            groups = []
            for src in gather:                      # one output position / flatten
                parts = [x[r * bt:(r + 1) * bt, :] for r in src]   # aligned slices
                groups.append(parts[0] if len(parts) == 1
                              else jnp.concatenate(parts, axis=-1))
            x = groups[0] if len(groups) == 1 else jnp.concatenate(groups, axis=0)
        y = jnp.dot(x, w_ref[...], preferred_element_type=jnp.float32) + b_ref[...]
        if layer["relu"]:
            y = jnp.maximum(y, 0.0)
        x = y
    out_ref[...] = x.astype(out_ref.dtype)          # (bt, hidden) lane-dense store


# -----------------------------------------------------------------------------
# parameter init (torch-like shapes/init)
# -----------------------------------------------------------------------------
def init_conv_encoder_params(key, obs_shape, hidden_size_list, kernel_size, stride):
    assert len(hidden_size_list) <= len(kernel_size) + 1, (
        "ResBlock branch not implemented")  # TODO(synk): ResBlock support
    cin, h, w = obs_shape
    params = {"convs": []}
    in_ch = cin
    for hs, k, s in zip(hidden_size_list[: len(kernel_size)], kernel_size, stride):
        key, kw_, kb_ = jax.random.split(key, 3)
        fan_in = in_ch * k * k
        bound = 1.0 / float(np.sqrt(fan_in))
        wgt = jax.random.uniform(kw_, (hs, in_ch, k, k), jnp.float32, -bound, bound)
        bias = jax.random.uniform(kb_, (hs,), jnp.float32, -bound, bound)
        params["convs"].append({"w": wgt, "b": bias, "k": k, "stride": s})
        in_ch = hs
        h, w = _conv_out(h, k, s), _conv_out(w, k, s)
    flatten_size = in_ch * h * w
    key, kw_, kb_ = jax.random.split(key, 3)
    bound = 1.0 / float(np.sqrt(flatten_size))
    params["mid_w"] = jax.random.uniform(
        kw_, (hidden_size_list[-1], flatten_size), jnp.float32, -bound, bound)
    params["mid_b"] = jax.random.uniform(
        kb_, (hidden_size_list[-1],), jnp.float32, -bound, bound)
    return params


# -----------------------------------------------------------------------------
# one-time packing of the weights + static gather plan into kernel layout
# -----------------------------------------------------------------------------
def build_encoder_plan(params, obs_shape, batch_block=8):
    assert batch_block % 8 == 0, "batch_block must be a multiple of 8 (sublanes)"
    cin, h, w = obs_shape
    convs = params["convs"]

    # Layer 1: im2col done by the wrapper; weight packed as (k*k*cin [pad8], cout).
    c0 = convs[0]
    k0, s0 = c0["k"], c0["stride"]
    ho, wo = _conv_out(h, k0, s0), _conv_out(w, k0, s0)
    w_np = np.asarray(c0["w"], np.float32)
    cout0 = w_np.shape[0]
    kk0 = k0 * k0 * cin
    k1_pad = _round_up(kk0, 8)
    w1 = np.zeros((k1_pad, cout0), np.float32)
    for di in range(k0):
        for dj in range(k0):
            t = di * k0 + dj
            w1[t * cin:(t + 1) * cin, :] = w_np[:, :, di, dj].T
    b1 = np.asarray(c0["b"], np.float32).reshape(1, cout0)
    layers = [dict(w=jnp.asarray(w1), b=jnp.asarray(b1), relu=True, gather=None)]
    cur_h, cur_w, cur_c = ho, wo, cout0

    # Later conv layers: static gather (source position groups per output pos)
    # + weight (k*k*cin, cout) -- contracted dim NOT padded to 128.
    for conv in convs[1:]:
        k, s = conv["k"], conv["stride"]
        w_np = np.asarray(conv["w"], np.float32)
        cout = w_np.shape[0]
        ho2, wo2 = _conv_out(cur_h, k, s), _conv_out(cur_w, k, s)
        gather = []
        for oh in range(ho2):
            for ow in range(wo2):
                gather.append(tuple((s * oh + di) * cur_w + (s * ow + dj)
                                    for di in range(k) for dj in range(k)))
        wm = np.zeros((k * k * cur_c, cout), np.float32)
        for di in range(k):
            for dj in range(k):
                t = di * k + dj
                wm[t * cur_c:(t + 1) * cur_c, :] = w_np[:, :, di, dj].T
        bm = np.asarray(conv["b"], np.float32).reshape(1, cout)
        layers.append(dict(w=jnp.asarray(wm), b=jnp.asarray(bm),
                           relu=True, gather=tuple(gather)))
        cur_h, cur_w, cur_c = ho2, wo2, cout

    # Final Linear: NCHW flatten (feature index = c*H*W + p) folded into the
    # packed weight; gather concatenates all positions along lanes per sample.
    mid_w = np.asarray(params["mid_w"], np.float32)     # (hidden, c*h*w)
    mid_b = np.asarray(params["mid_b"], np.float32)
    hidden = mid_w.shape[0]
    pos = cur_h * cur_w
    wl = np.zeros((pos * cur_c, hidden), np.float32)
    for p in range(pos):
        for c in range(cur_c):
            wl[p * cur_c + c, :] = mid_w[:, c * pos + p]
    bl = mid_b.reshape(1, hidden)
    layers.append(dict(w=jnp.asarray(wl), b=jnp.asarray(bl),
                       relu=False, gather=(tuple(range(pos)),)))

    return dict(obs_shape=(cin, h, w), bt=batch_block, k0=k0, s0=s0,
                ho0=ho, wo0=wo, k1_pad=k1_pad, hidden=hidden, layers=layers)


# -----------------------------------------------------------------------------
# forward
# -----------------------------------------------------------------------------
def conv_encoder_forward(plan, x_nchw):
    """x_nchw: (N, C, H, W) f32 -> (N, hidden) f32, one fused Pallas kernel."""
    n, cin, h, w = x_nchw.shape
    assert (cin, h, w) == plan["obs_shape"]
    bt = plan["bt"]
    k, s = plan["k0"], plan["s0"]
    ho, wo = plan["ho0"], plan["wo0"]
    pos1 = ho * wo
    kdim = plan["k1_pad"]
    hidden = plan["hidden"]

    # Pad batch up to a multiple of the batch block.
    n_pad = _round_up(n, bt)
    if n_pad != n:
        x_nchw = jnp.pad(x_nchw, ((0, n_pad - n), (0, 0), (0, 0), (0, 0)))
    nb = n_pad // bt

    # Layer-1 im2col + layout plumbing (wrapper-side, tiny raw observation only).
    x_nhwc = jnp.transpose(x_nchw, (0, 2, 3, 1))                    # (N, H, W, C)
    taps = [x_nhwc[:, di:di + s * (ho - 1) + 1:s, dj:dj + s * (wo - 1) + 1:s, :]
            for di in range(k) for dj in range(k)]
    pat = jnp.concatenate(taps, axis=-1)                            # (N,ho,wo,k*k*C)
    kk = k * k * cin
    if kdim > kk:
        pat = jnp.pad(pat, ((0, 0), (0, 0), (0, 0), (0, kdim - kk)))
    # rows ordered (position, sample-within-block); batch-contiguous leading dim.
    pat = jnp.transpose(pat, (1, 2, 0, 3)).reshape(pos1, nb, bt, kdim)
    pat = jnp.transpose(pat, (1, 0, 2, 3)).reshape(nb, pos1 * bt, kdim)

    meta = dict(bt=bt, layers=tuple(dict(gather=l["gather"], relu=l["relu"])
                                    for l in plan["layers"]))

    operands = [pat]
    in_specs = [pl.BlockSpec((1, pos1 * bt, kdim), lambda b: (b, 0, 0))]
    for layer in plan["layers"]:
        operands += [layer["w"], layer["b"]]
        in_specs += [pl.BlockSpec(layer["w"].shape, lambda b: (0, 0)),
                     pl.BlockSpec(layer["b"].shape, lambda b: (0, 0))]

    out = pl.pallas_call(
        functools.partial(_encoder_kernel, meta=meta),
        out_shape=jax.ShapeDtypeStruct((n_pad, hidden), jnp.float32),
        grid=(nb,),
        in_specs=in_specs,
        out_specs=pl.BlockSpec((bt, hidden), lambda b: (b, 0)),
        compiler_params=pltpu.CompilerParams(
            dimension_semantics=("parallel",)),
    )(*operands)
    return out[:n]


# -----------------------------------------------------------------------------
# pure-JAX reference (correctness check only)
# -----------------------------------------------------------------------------
def _reference_forward(params, x_nchw):
    x = x_nchw
    for layer in params["convs"]:
        s = layer["stride"]
        x = jax.lax.conv_general_dilated(
            x, layer["w"], window_strides=(s, s), padding="VALID",
            dimension_numbers=("NCHW", "OIHW", "NCHW"))
        x = jax.nn.relu(x + layer["b"][None, :, None, None])
    x = x.reshape(x.shape[0], -1)
    return x @ params["mid_w"].T + params["mid_b"]


if __name__ == "__main__":
    # obs_shape = (C, H, W); defaults from the torch module.
    obs_shape = (4, 16, 16)
    hidden_size_list = [32, 64, 128]
    kernel_size = [3, 3, 3]
    stride = [2, 2, 2]
    batch = 16          # 2 grid steps of batch_block=8 -> both v7x TCs busy

    key = jax.random.PRNGKey(0)
    key, kp, kx = jax.random.split(key, 3)
    params = init_conv_encoder_params(kp, obs_shape, hidden_size_list,
                                      kernel_size, stride)
    plan = build_encoder_plan(params, obs_shape, batch_block=8)
    x = jax.random.normal(kx, (batch, *obs_shape), jnp.float32)

    fwd = jax.jit(lambda xx: conv_encoder_forward(plan, xx))
    out = jax.block_until_ready(fwd(x))
    assert out.shape == (batch, hidden_size_list[-1]), out.shape

    ref = jax.block_until_ready(_reference_forward(params, x))
    max_err = float(jnp.max(jnp.abs(out - ref)))
    assert jnp.allclose(out, ref, atol=1e-3, rtol=1e-3), (
        f"mismatch vs reference, max abs err = {max_err}")

    print("KERNEL_OK")
</pallas_src>

<mosaic_0001>
module attributes {stable_mosaic.version = 11 : i64} {
  func.func @_encoder_kernel(%arg0: i32, %arg1: memref<1x392x40xf32, #tpu.memory_space<vmem>>, %arg2: memref<40x32xf32, #tpu.memory_space<vmem>>, %arg3: memref<1x32xf32, #tpu.memory_space<vmem>>, %arg4: memref<288x64xf32, #tpu.memory_space<vmem>>, %arg5: memref<1x64xf32, #tpu.memory_space<vmem>>, %arg6: memref<576x128xf32, #tpu.memory_space<vmem>>, %arg7: memref<1x128xf32, #tpu.memory_space<vmem>>, %arg8: memref<128x128xf32, #tpu.memory_space<vmem>>, %arg9: memref<1x128xf32, #tpu.memory_space<vmem>>, %arg10: memref<8x128xf32, #tpu.memory_space<vmem>>) attributes {dimension_semantics = [#tpu.dimension_semantics<parallel>], iteration_bounds = array<i64: 2>, scalar_prefetch = 0 : i64, scratch_operands = 0 : i64, tpu.core_type = #tpu.core_type<tc>, window_params = [{transform_indices = @transform_0, window_bounds = array<i64: 1, 392, 40>}, {pipeline_mode = #tpu.pipeline_mode<synchronous>, transform_indices = @transform_1, window_bounds = array<i64: 40, 32>}, {pipeline_mode = #tpu.pipeline_mode<synchronous>, transform_indices = @transform_2, window_bounds = array<i64: 1, 32>}, {pipeline_mode = #tpu.pipeline_mode<synchronous>, transform_indices = @transform_3, window_bounds = array<i64: 288, 64>}, {pipeline_mode = #tpu.pipeline_mode<synchronous>, transform_indices = @transform_4, window_bounds = array<i64: 1, 64>}, {pipeline_mode = #tpu.pipeline_mode<synchronous>, transform_indices = @transform_5, window_bounds = array<i64: 576, 128>}, {pipeline_mode = #tpu.pipeline_mode<synchronous>, transform_indices = @transform_6, window_bounds = array<i64: 1, 128>}, {pipeline_mode = #tpu.pipeline_mode<synchronous>, transform_indices = @transform_7, window_bounds = array<i64: 128, 128>}, {pipeline_mode = #tpu.pipeline_mode<synchronous>, transform_indices = @transform_8, window_bounds = array<i64: 1, 128>}, {transform_indices = @transform_9, window_bounds = array<i64: 8, 128>}]} {
    %c0 = arith.constant 0 : index
    %c0_0 = arith.constant 0 : index
    %c0_1 = arith.constant 0 : index
    %0 = vector.load %arg1[%c0, %c0_0, %c0_1] : memref<1x392x40xf32, #tpu.memory_space<vmem>>, vector<1x392x40xf32>
    %1 = vector.shape_cast %0 : vector<1x392x40xf32> to vector<392x40xf32>
    %c0_2 = arith.constant 0 : index
    %c0_3 = arith.constant 0 : index
    %2 = vector.load %arg2[%c0_2, %c0_3] : memref<40x32xf32, #tpu.memory_space<vmem>>, vector<40x32xf32>
    %cst = arith.constant dense<0.000000e+00> : vector<392x32xf32>
    %3 = tpu.matmul %1, %2, %cst {dimension_numbers = #tpu.dot_dimension_numbers<[1], [0], [0], [1], [0, 0, 1, 1], [], []>} : vector<392x40xf32>, vector<40x32xf32>, vector<392x32xf32> -> vector<392x32xf32>
    %c0_4 = arith.constant 0 : index
    %c0_5 = arith.constant 0 : index
    %4 = vector.load %arg3[%c0_4, %c0_5] : memref<1x32xf32, #tpu.memory_space<vmem>>, vector<1x32xf32>
    %5 = vector.broadcast %4 : vector<1x32xf32> to vector<392x32xf32>
    %6 = arith.addf %3, %5 : vector<392x32xf32>
    %cst_6 = arith.constant 0.000000e+00 : f32
    %7 = vector.broadcast %cst_6 : f32 to vector<392x32xf32>
    %8 = arith.maximumf %6, %7 : vector<392x32xf32>
    %9 = vector.extract_strided_slice %8 {offsets = [0, 0], sizes = [8, 32], strides = [1, 1]} : vector<392x32xf32> to vector<8x32xf32>
    %10 = vector.extract_strided_slice %8 {offsets = [8, 0], sizes = [8, 32], strides = [1, 1]} : vector<392x32xf32> to vector<8x32xf32>
    %11 = vector.extract_strided_slice %8 {offsets = [16, 0], sizes = [8, 32], strides = [1, 1]} : vector<392x32xf32> to vector<8x32xf32>
    %12 = vector.extract_strided_slice %8 {offsets = [56, 0], sizes = [8, 32], strides = [1, 1]} : vector<392x32xf32> to vector<8x32xf32>
    %13 = vector.extract_strided_slice %8 {offsets = [64, 0], sizes = [8, 32], strides = [1, 1]} : vector<392x32xf32> to vector<8x32xf32>
    %14 = vector.extract_strided_slice %8 {offsets = [72, 0], sizes = [8, 32], strides = [1, 1]} : vector<392x32xf32> to vector<8x32xf32>
    %15 = vector.extract_strided_slice %8 {offsets = [112, 0], sizes = [8, 32], strides = [1, 1]} : vector<392x32xf32> to vector<8x32xf32>
    %16 = vector.extract_strided_slice %8 {offsets = [120, 0], sizes = [8, 32], strides = [1, 1]} : vector<392x32xf32> to vector<8x32xf32>
    %17 = vector.extract_strided_slice %8 {offsets = [128, 0], sizes = [8, 32], strides = [1, 1]} : vector<392x32xf32> to vector<8x32xf32>
    %18 = tpu.concatenate %9, %10, %11, %12, %13, %14, %15, %16, %17 in 1 : vector<8x32xf32>, vector<8x32xf32>, vector<8x32xf32>, vector<8x32xf32>, vector<8x32xf32>, vector<8x32xf32>, vector<8x32xf32>, vector<8x32xf32>, vector<8x32xf32> -> vector<8x288xf32>
    %19 = vector.extract_strided_slice %8 {offsets = [16, 0], sizes = [8, 32], strides = [1, 1]} : vector<392x32xf32> to vector<8x32xf32>
    %20 = vector.extract_strided_slice %8 {offsets = [24, 0], sizes = [8, 32], strides = [1, 1]} : vector<392x32xf32> to vector<8x32xf32>
    %21 = vector.extract_strided_slice %8 {offsets = [32, 0], sizes = [8, 32], strides = [1, 1]} : vector<392x32xf32> to vector<8x32xf32>
    %22 = vector.extract_strided_slice %8 {offsets = [72, 0], sizes = [8, 32], strides = [1, 1]} : vector<392x32xf32> to vector<8x32xf32>
    %23 = vector.extract_strided_slice %8 {offsets = [80, 0], sizes = [8, 32], strides = [1, 1]} : vector<392x32xf32> to vector<8x32xf32>
    %24 = vector.extract_strided_slice %8 {offsets = [88, 0], sizes = [8, 32], strides = [1, 1]} : vector<392x32xf32> to vector<8x32xf32>
    %25 = vector.extract_strided_slice %8 {offsets = [128, 0], sizes = [8, 32], strides = [1, 1]} : vector<392x32xf32> to vector<8x32xf32>
    %26 = vector.extract_strided_slice %8 {offsets = [136, 0], sizes = [8, 32], strides = [1, 1]} : vector<392x32xf32> to vector<8x32xf32>
    %27 = vector.extract_strided_slice %8 {offsets = [144, 0], sizes = [8, 32], strides = [1, 1]} : vector<392x32xf32> to vector<8x32xf32>
    %28 = tpu.concatenate %19, %20, %21, %22, %23, %24, %25, %26, %27 in 1 : vector<8x32xf32>, vector<8x32xf32>, vector<8x32xf32>, vector<8x32xf32>, vector<8x32xf32>, vector<8x32xf32>, vector<8x32xf32>, vector<8x32xf32>, vector<8x32xf32> -> vector<8x288xf32>
    %29 = vector.extract_strided_slice %8 {offsets = [32, 0], sizes = [8, 32], strides = [1, 1]} : vector<392x32xf32> to vector<8x32xf32>
    %30 = vector.extract_strided_slice %8 {offsets = [40, 0], sizes = [8, 32], strides = [1, 1]} : vector<392x32xf32> to vector<8x32xf32>
    %31 = vector.extract_strided_slice %8 {offsets = [48, 0], sizes = [8, 32], strides = [1, 1]} : vector<392x32xf32> to vector<8x32xf32>
    %32 = vector.extract_strided_slice %8 {offsets = [88, 0], sizes = [8, 32], strides = [1, 1]} : vector<392x32xf32> to vector<8x32xf32>
    %33 = vector.extract_strided_slice %8 {offsets = [96, 0], sizes = [8, 32], strides = [1, 1]} : vector<392x32xf32> to vector<8x32xf32>
    %34 = vector.extract_strided_slice %8 {offsets = [104, 0], sizes = [8, 32], strides = [1, 1]} : vector<392x32xf32> to vector<8x32xf32>
    %35 = vector.extract_strided_slice %8 {offsets = [144, 0], sizes = [8, 32], strides = [1, 1]} : vector<392x32xf32> to vector<8x32xf32>
    %36 = vector.extract_strided_slice %8 {offsets = [152, 0], sizes = [8, 32], strides = [1, 1]} : vector<392x32xf32> to vector<8x32xf32>
    %37 = vector.extract_strided_slice %8 {offsets = [160, 0], sizes = [8, 32], strides = [1, 1]} : vector<392x32xf32> to vector<8x32xf32>
    %38 = tpu.concatenate %29, %30, %31, %32, %33, %34, %35, %36, %37 in 1 : vector<8x32xf32>, vector<8x32xf32>, vector<8x32xf32>, vector<8x32xf32>, vector<8x32xf32>, vector<8x32xf32>, vector<8x32xf32>, vector<8x32xf32>, vector<8x32xf32> -> vector<8x288xf32>
    %39 = vector.extract_strided_slice %8 {offsets = [112, 0], sizes = [8, 32], strides = [1, 1]} : vector<392x32xf32> to vector<8x32xf32>
    %40 = vector.extract_strided_slice %8 {offsets = [120, 0], sizes = [8, 32], strides = [1, 1]} : vector<392x32xf32> to vector<8x32xf32>
    %41 = vector.extract_strided_slice %8 {offsets = [128, 0], sizes = [8, 32], strides = [1, 1]} : vector<392x32xf32> to vector<8x32xf32>
    %42 = vector.extract_strided_slice %8 {offsets = [168, 0], sizes = [8, 32], strides = [1, 1]} : vector<392x32xf32> to vector<8x32xf32>
    %43 = vector.extract_strided_slice %8 {offsets = [176, 0], sizes = [8, 32], strides = [1, 1]} : vector<392x32xf32> to vector<8x32xf32>
    %44 = vector.extract_strided_slice %8 {offsets = [184, 0], sizes = [8, 32], strides = [1, 1]} : vector<392x32xf32> to vector<8x32xf32>
    %45 = vector.extract_strided_slice %8 {offsets = [224, 0], sizes = [8, 32], strides = [1, 1]} : vector<392x32xf32> to vector<8x32xf32>
    %46 = vector.extract_strided_slice %8 {offsets = [232, 0], sizes = [8, 32], strides = [1, 1]} : vector<392x32xf32> to vector<8x32xf32>
    %47 = vector.extract_strided_slice %8 {offsets = [240, 0], sizes = [8, 32], strides = [1, 1]} : vector<392x32xf32> to vector<8x32xf32>
    %48 = tpu.concatenate %39, %40, %41, %42, %43, %44, %45, %46, %47 in 1 : vector<8x32xf32>, vector<8x32xf32>, vector<8x32xf32>, vector<8x32xf32>, vector<8x32xf32>, vector<8x32xf32>, vector<8x32xf32>, vector<8x32xf32>, vector<8x32xf32> -> vector<8x288xf32>
    %49 = vector.extract_strided_slice %8 {offsets = [128, 0], sizes = [8, 32], strides = [1, 1]} : vector<392x32xf32> to vector<8x32xf32>
    %50 = vector.extract_strided_slice %8 {offsets = [136, 0], sizes = [8, 32], strides = [1, 1]} : vector<392x32xf32> to vector<8x32xf32>
    %51 = vector.extract_strided_slice %8 {offsets = [144, 0], sizes = [8, 32], strides = [1, 1]} : vector<392x32xf32> to vector<8x32xf32>
    %52 = vector.extract_strided_slice %8 {offsets = [184, 0], sizes = [8, 32], strides = [1, 1]} : vector<392x32xf32> to vector<8x32xf32>
    %53 = vector.extract_strided_slice %8 {offsets = [192, 0], sizes = [8, 32], strides = [1, 1]} : vector<392x32xf32> to vector<8x32xf32>
    %54 = vector.extract_strided_slice %8 {offsets = [200, 0], sizes = [8, 32], strides = [1, 1]} : vector<392x32xf32> to vector<8x32xf32>
    %55 = vector.extract_strided_slice %8 {offsets = [240, 0], sizes = [8, 32], strides = [1, 1]} : vector<392x32xf32> to vector<8x32xf32>
    %56 = vector.extract_strided_slice %8 {offsets = [248, 0], sizes = [8, 32], strides = [1, 1]} : vector<392x32xf32> to vector<8x32xf32>
    %57 = vector.extract_strided_slice %8 {offsets = [256, 0], sizes = [8, 32], strides = [1, 1]} : vector<392x32xf32> to vector<8x32xf32>
    %58 = tpu.concatenate %49, %50, %51, %52, %53, %54, %55, %56, %57 in 1 : vector<8x32xf32>, vector<8x32xf32>, vector<8x32xf32>, vector<8x32xf32>, vector<8x32xf32>, vector<8x32xf32>, vector<8x32xf32>, vector<8x32xf32>, vector<8x32xf32> -> vector<8x288xf32>
    %59 = vector.extract_strided_slice %8 {offsets = [144, 0], sizes = [8, 32], strides = [1, 1]} : vector<392x32xf32> to vector<8x32xf32>
    %60 = vector.extract_strided_slice %8 {offsets = [152, 0], sizes = [8, 32], strides = [1, 1]} : vector<392x32xf32> to vector<8x32xf32>
    %61 = vector.extract_strided_slice %8 {offsets = [160, 0], sizes = [8, 32], strides = [1, 1]} : vector<392x32xf32> to vector<8x32xf32>
    %62 = vector.extract_strided_slice %8 {offsets = [200, 0], sizes = [8, 32], strides = [1, 1]} : vector<392x32xf32> to vector<8x32xf32>
    %63 = vector.extract_strided_slice %8 {offsets = [208, 0], sizes = [8, 32], strides = [1, 1]} : vector<392x32xf32> to vector<8x32xf32>
    %64 = vector.extract_strided_slice %8 {offsets = [216, 0], sizes = [8, 32], strides = [1, 1]} : vector<392x32xf32> to vector<8x32xf32>
    %65 = vector.extract_strided_slice %8 {offsets = [256, 0], sizes = [8, 32], strides = [1, 1]} : vector<392x32xf32> to vector<8x32xf32>
    %66 = vector.extract_strided_slice %8 {offsets = [264, 0], sizes = [8, 32], strides = [1, 1]} : vector<392x32xf32> to vector<8x32xf32>
    %67 = vector.extract_strided_slice %8 {offsets = [272, 0], sizes = [8, 32], strides = [1, 1]} : vector<392x32xf32> to vector<8x32xf32>
    %68 = tpu.concatenate %59, %60, %61, %62, %63, %64, %65, %66, %67 in 1 : vector<8x32xf32>, vector<8x32xf32>, vector<8x32xf32>, vector<8x32xf32>, vector<8x32xf32>, vector<8x32xf32>, vector<8x32xf32>, vector<8x32xf32>, vector<8x32xf32> -> vector<8x288xf32>
    %69 = vector.extract_strided_slice %8 {offsets = [224, 0], sizes = [8, 32], strides = [1, 1]} : vector<392x32xf32> to vector<8x32xf32>
    %70 = vector.extract_strided_slice %8 {offsets = [232, 0], sizes = [8, 32], strides = [1, 1]} : vector<392x32xf32> to vector<8x32xf32>
    %71 = vector.extract_strided_slice %8 {offsets = [240, 0], sizes = [8, 32], strides = [1, 1]} : vector<392x32xf32> to vector<8x32xf32>
    %72 = vector.extract_strided_slice %8 {offsets = [280, 0], sizes = [8, 32], strides = [1, 1]} : vector<392x32xf32> to vector<8x32xf32>
    %73 = vector.extract_strided_slice %8 {offsets = [288, 0], sizes = [8, 32], strides = [1, 1]} : vector<392x32xf32> to vector<8x32xf32>
    %74 = vector.extract_strided_slice %8 {offsets = [296, 0], sizes = [8, 32], strides = [1, 1]} : vector<392x32xf32> to vector<8x32xf32>
    %75 = vector.extract_strided_slice %8 {offsets = [336, 0], sizes = [8, 32], strides = [1, 1]} : vector<392x32xf32> to vector<8x32xf32>
    %76 = vector.extract_strided_slice %8 {offsets = [344, 0], sizes = [8, 32], strides = [1, 1]} : vector<392x32xf32> to vector<8x32xf32>
    %77 = vector.extract_strided_slice %8 {offsets = [352, 0], sizes = [8, 32], strides = [1, 1]} : vector<392x32xf32> to vector<8x32xf32>
    %78 = tpu.concatenate %69, %70, %71, %72, %73, %74, %75, %76, %77 in 1 : vector<8x32xf32>, vector<8x32xf32>, vector<8x32xf32>, vector<8x32xf32>, vector<8x32xf32>, vector<8x32xf32>, vector<8x32xf32>, vector<8x32xf32>, vector<8x32xf32> -> vector<8x288xf32>
    %79 = vector.extract_strided_slice %8 {offsets = [240, 0], sizes = [8, 32], strides = [1, 1]} : vector<392x32xf32> to vector<8x32xf32>
    %80 = vector.extract_strided_slice %8 {offsets = [248, 0], sizes = [8, 32], strides = [1, 1]} : vector<392x32xf32> to vector<8x32xf32>
    %81 = vector.extract_strided_slice %8 {offsets = [256, 0], sizes = [8, 32], strides = [1, 1]} : vector<392x32xf32> to vector<8x32xf32>
    %82 = vector.extract_strided_slice %8 {offsets = [296, 0], sizes = [8, 32], strides = [1, 1]} : vector<392x32xf32> to vector<8x32xf32>
    %83 = vector.extract_strided_slice %8 {offsets = [304, 0], sizes = [8, 32], strides = [1, 1]} : vector<392x32xf32> to vector<8x32xf32>
    %84 = vector.extract_strided_slice %8 {offsets = [312, 0], sizes = [8, 32], strides = [1, 1]} : vector<392x32xf32> to vector<8x32xf32>
    %85 = vector.extract_strided_slice %8 {offsets = [352, 0], sizes = [8, 32], strides = [1, 1]} : vector<392x32xf32> to vector<8x32xf32>
    %86 = vector.extract_strided_slice %8 {offsets = [360, 0], sizes = [8, 32], strides = [1, 1]} : vector<392x32xf32> to vector<8x32xf32>
    %87 = vector.extract_strided_slice %8 {offsets = [368, 0], sizes = [8, 32], strides = [1, 1]} : vector<392x32xf32> to vector<8x32xf32>
    %88 = tpu.concatenate %79, %80, %81, %82, %83, %84, %85, %86, %87 in 1 : vector<8x32xf32>, vector<8x32xf32>, vector<8x32xf32>, vector<8x32xf32>, vector<8x32xf32>, vector<8x32xf32>, vector<8x32xf32>, vector<8x32xf32>, vector<8x32xf32> -> vector<8x288xf32>
    %89 = vector.extract_strided_slice %8 {offsets = [256, 0], sizes = [8, 32], strides = [1, 1]} : vector<392x32xf32> to vector<8x32xf32>
    %90 = vector.extract_strided_slice %8 {offsets = [264, 0], sizes = [8, 32], strides = [1, 1]} : vector<392x32xf32> to vector<8x32xf32>
    %91 = vector.extract_strided_slice %8 {offsets = [272, 0], sizes = [8, 32], strides = [1, 1]} : vector<392x32xf32> to vector<8x32xf32>
    %92 = vector.extract_strided_slice %8 {offsets = [312, 0], sizes = [8, 32], strides = [1, 1]} : vector<392x32xf32> to vector<8x32xf32>
    %93 = vector.extract_strided_slice %8 {offsets = [320, 0], sizes = [8, 32], strides = [1, 1]} : vector<392x32xf32> to vector<8x32xf32>
    %94 = vector.extract_strided_slice %8 {offsets = [328, 0], sizes = [8, 32], strides = [1, 1]} : vector<392x32xf32> to vector<8x32xf32>
    %95 = vector.extract_strided_slice %8 {offsets = [368, 0], sizes = [8, 32], strides = [1, 1]} : vector<392x32xf32> to vector<8x32xf32>
    %96 = vector.extract_strided_slice %8 {offsets = [376, 0], sizes = [8, 32], strides = [1, 1]} : vector<392x32xf32> to vector<8x32xf32>
    %97 = vector.extract_strided_slice %8 {offsets = [384, 0], sizes = [8, 32], strides = [1, 1]} : vector<392x32xf32> to vector<8x32xf32>
    %98 = tpu.concatenate %89, %90, %91, %92, %93, %94, %95, %96, %97 in 1 : vector<8x32xf32>, vector<8x32xf32>, vector<8x32xf32>, vector<8x32xf32>, vector<8x32xf32>, vector<8x32xf32>, vector<8x32xf32>, vector<8x32xf32>, vector<8x32xf32> -> vector<8x288xf32>
    %99 = tpu.concatenate %18, %28, %38, %48, %58, %68, %78, %88, %98 in 0 : vector<8x288xf32>, vector<8x288xf32>, vector<8x288xf32>, vector<8x288xf32>, vector<8x288xf32>, vector<8x288xf32>, vector<8x288xf32>, vector<8x288xf32>, vector<8x288xf32> -> vector<72x288xf32>
    %c0_7 = arith.constant 0 : index
    %c0_8 = arith.constant 0 : index
    %100 = vector.load %arg4[%c0_7, %c0_8] : memref<288x64xf32, #tpu.memory_space<vmem>>, vector<288x64xf32>
    %cst_9 = arith.constant dense<0.000000e+00> : vector<72x64xf32>
    %101 = tpu.matmul %99, %100, %cst_9 {dimension_numbers = #tpu.dot_dimension_numbers<[1], [0], [0], [1], [0, 0, 1, 1], [], []>} : vector<72x288xf32>, vector<288x64xf32>, vector<72x64xf32> -> vector<72x64xf32>
    %c0_10 = arith.constant 0 : index
    %c0_11 = arith.constant 0 : index
    %102 = vector.load %arg5[%c0_10, %c0_11] : memref<1x64xf32, #tpu.memory_space<vmem>>, vector<1x64xf32>
    %103 = vector.broadcast %102 : vector<1x64xf32> to vector<72x64xf32>
    %104 = arith.addf %101, %103 : vector<72x64xf32>
    %cst_12 = arith.constant 0.000000e+00 : f32
    %105 = vector.broadcast %cst_12 : f32 to vector<72x64xf32>
    %106 = arith.maximumf %104, %105 : vector<72x64xf32>
    %107 = vector.extract_strided_slice %106 {offsets = [0, 0], sizes = [8, 64], strides = [1, 1]} : vector<72x64xf32> to vector<8x64xf32>
    %108 = vector.extract_strided_slice %106 {offsets = [8, 0], sizes = [8, 64], strides = [1, 1]} : vector<72x64xf32> to vector<8x64xf32>
    %109 = vector.extract_strided_slice %106 {offsets = [16, 0], sizes = [8, 64], strides = [1, 1]} : vector<72x64xf32> to vector<8x64xf32>
    %110 = vector.extract_strided_slice %106 {offsets = [24, 0], sizes = [8, 64], strides = [1, 1]} : vector<72x64xf32> to vector<8x64xf32>
    %111 = vector.extract_strided_slice %106 {offsets = [32, 0], sizes = [8, 64], strides = [1, 1]} : vector<72x64xf32> to vector<8x64xf32>
    %112 = vector.extract_strided_slice %106 {offsets = [40, 0], sizes = [8, 64], strides = [1, 1]} : vector<72x64xf32> to vector<8x64xf32>
    %113 = vector.extract_strided_slice %106 {offsets = [48, 0], sizes = [8, 64], strides = [1, 1]} : vector<72x64xf32> to vector<8x64xf32>
    %114 = vector.extract_strided_slice %106 {offsets = [56, 0], sizes = [8, 64], strides = [1, 1]} : vector<72x64xf32> to vector<8x64xf32>
    %115 = vector.extract_strided_slice %106 {offsets = [64, 0], sizes = [8, 64], strides = [1, 1]} : vector<72x64xf32> to vector<8x64xf32>
    %116 = tpu.concatenate %107, %108, %109, %110, %111, %112, %113, %114, %115 in 1 : vector<8x64xf32>, vector<8x64xf32>, vector<8x64xf32>, vector<8x64xf32>, vector<8x64xf32>, vector<8x64xf32>, vector<8x64xf32>, vector<8x64xf32>, vector<8x64xf32> -> vector<8x576xf32>
    %c0_13 = arith.constant 0 : index
    %c0_14 = arith.constant 0 : index
    %117 = vector.load %arg6[%c0_13, %c0_14] : memref<576x128xf32, #tpu.memory_space<vmem>>, vector<576x128xf32>
    %cst_15 = arith.constant dense<0.000000e+00> : vector<8x128xf32>
    %118 = tpu.matmul %116, %117, %cst_15 {dimension_numbers = #tpu.dot_dimension_numbers<[1], [0], [0], [1], [0, 0, 1, 1], [], []>} : vector<8x576xf32>, vector<576x128xf32>, vector<8x128xf32> -> vector<8x128xf32>
    %c0_16 = arith.constant 0 : index
    %c0_17 = arith.constant 0 : index
    %119 = vector.load %arg7[%c0_16, %c0_17] : memref<1x128xf32, #tpu.memory_space<vmem>>, vector<1x128xf32>
    %120 = vector.broadcast %119 : vector<1x128xf32> to vector<8x128xf32>
    %121 = arith.addf %118, %120 : vector<8x128xf32>
    %cst_18 = arith.constant 0.000000e+00 : f32
    %122 = vector.broadcast %cst_18 : f32 to vector<8x128xf32>
    %123 = arith.maximumf %121, %122 : vector<8x128xf32>
    %c0_19 = arith.constant 0 : index
    %c0_20 = arith.constant 0 : index
    %124 = vector.load %arg8[%c0_19, %c0_20] : memref<128x128xf32, #tpu.memory_space<vmem>>, vector<128x128xf32>
    %cst_21 = arith.constant dense<0.000000e+00> : vector<8x128xf32>
    %125 = tpu.matmul %123, %124, %cst_21 {dimension_numbers = #tpu.dot_dimension_numbers<[1], [0], [0], [1], [0, 0, 1, 1], [], []>} : vector<8x128xf32>, vector<128x128xf32>, vector<8x128xf32> -> vector<8x128xf32>
    %c0_22 = arith.constant 0 : index
    %c0_23 = arith.constant 0 : index
    %126 = vector.load %arg9[%c0_22, %c0_23] : memref<1x128xf32, #tpu.memory_space<vmem>>, vector<1x128xf32>
    %127 = vector.broadcast %126 : vector<1x128xf32> to vector<8x128xf32>
    %128 = arith.addf %125, %127 : vector<8x128xf32>
    %c0_24 = arith.constant 0 : index
    %c0_25 = arith.constant 0 : index
    %129 = vector.load %arg10[%c0_24, %c0_25] : memref<8x128xf32, #tpu.memory_space<vmem>>, vector<8x128xf32>
    tpu.vector_store %arg10[%c0_24, %c0_25], %128 {strides = array<i32>} : memref<8x128xf32, #tpu.memory_space<vmem>>, vector<8x128xf32>,
    return
  }
  func.func @transform_0(%arg0: i32) -> (i32, i32, i32) {
    %c0_i32 = arith.constant 0 : i32
    %c0_i32_0 = arith.constant 0 : i32
    %c0_i32_1 = arith.constant 0 : i32
    return %arg0, %c0_i32, %c0_i32_0 : i32, i32, i32
  }
  func.func @transform_1(%arg0: i32) -> (i32, i32) {
    %c0_i32 = arith.constant 0 : i32
    %c0_i32_0 = arith.constant 0 : i32
    %c0_i32_1 = arith.constant 0 : i32
    return %c0_i32, %c0_i32_0 : i32, i32
  }
  func.func @transform_2(%arg0: i32) -> (i32, i32) {
    %c0_i32 = arith.constant 0 : i32
    %c0_i32_0 = arith.constant 0 : i32
    %c0_i32_1 = arith.constant 0 : i32
    return %c0_i32, %c0_i32_0 : i32, i32
  }
  func.func @transform_3(%arg0: i32) -> (i32, i32) {
    %c0_i32 = arith.constant 0 : i32
    %c0_i32_0 = arith.constant 0 : i32
    %c0_i32_1 = arith.constant 0 : i32
    return %c0_i32, %c0_i32_0 : i32, i32
  }
  func.func @transform_4(%arg0: i32) -> (i32, i32) {
    %c0_i32 = arith.constant 0 : i32
    %c0_i32_0 = arith.constant 0 : i32
    %c0_i32_1 = arith.constant 0 : i32
    return %c0_i32, %c0_i32_0 : i32, i32
  }
  func.func @transform_5(%arg0: i32) -> (i32, i32) {
    %c0_i32 = arith.constant 0 : i32
    %c0_i32_0 = arith.constant 0 : i32
    %c0_i32_1 = arith.constant 0 : i32
    return %c0_i32, %c0_i32_0 : i32, i32
  }
  func.func @transform_6(%arg0: i32) -> (i32, i32) {
    %c0_i32 = arith.constant 0 : i32
    %c0_i32_0 = arith.constant 0 : i32
    %c0_i32_1 = arith.constant 0 : i32
    return %c0_i32, %c0_i32_0 : i32, i32
  }
  func.func @transform_7(%arg0: i32) -> (i32, i32) {
    %c0_i32 = arith.constant 0 : i32
    %c0_i32_0 = arith.constant 0 : i32
    %c0_i32_1 = arith.constant 0 : i32
    return %c0_i32, %c0_i32_0 : i32, i32
  }
  func.func @transform_8(%arg0: i32) -> (i32, i32) {
    %c0_i32 = arith.constant 0 : i32
    %c0_i32_0 = arith.constant 0 : i32
    %c0_i32_1 = arith.constant 0 : i32
    return %c0_i32, %c0_i32_0 : i32, i32
  }
  func.func @transform_9(%arg0: i32) -> (i32, i32) {
    %c0_i32 = arith.constant 0 : i32
    %c0_i32_0 = arith.constant 0 : i32
    return %arg0, %c0_i32 : i32, i32
  }
}

</mosaic_0001>

<bundles_post_ra>
// kernel: _lambda_.1
= control target key start
LH: loop header
LB: loop body
LE: loop exit
PB: predicated region body
PF: predicated region fallthrough
CT: control target
= control target key end

     0   :  { %14 = vsyncpa [#allocation3], 0  ;;  %s3848_s0 = inlined_call_operand.vmem [shape: f32[2,392,40], index: 0, kind: input, shape index: {}]   ;;  %s3849_s1 = inlined_call_operand.vmem [shape: f32[40,32], index: 1, kind: input, shape index: {}]   ;;  %s3850_s2 = inlined_call_operand.vmem [shape: f32[1,32], index: 2, kind: input, shape index: {}]   ;;  %s3851_s3 = inlined_call_operand.vmem [shape: f32[288,64], index: 3, kind: input, shape index: {}]   ;;  %s3852_s4 = inlined_call_operand.vmem [shape: f32[1,64], index: 4, kind: input, shape index: {}]   ;;  %s3853_s5 = inlined_call_operand.vmem [shape: f32[576,128], index: 5, kind: input, shape index: {}]   ;;  %s3854_s6 = inlined_call_operand.vmem [shape: f32[1,128], index: 6, kind: input, shape index: {}]   ;;  %s3855_s7 = inlined_call_operand.vmem [shape: f32[128,128], index: 7, kind: input, shape index: {}]   ;;  %s3856_s8 = inlined_call_operand.vmem [shape: f32[1,128], index: 8, kind: input, shape index: {}]   ;;  %s3857_s9 = inlined_call_operand.hbm [shape: f32[16,128], index: 9, kind: output, shape index: {}]  }
   0x1   :  { %16 = vsyncpa [#allocation3 + $0x1], 0  ;;  %s2754_s30 = smov 0   ;;  %s2756_s10 = smov 0  }
   0x2   :  { %s2758_s11 = smov 0   ;;  %s2760_s12 = smov 0  }
   0x3 LB: > { %s2775_s13 = sadd.s32 4294967295, %s2696_s12   ;;  %s1915_s14 = sadd.s32 4294967294, %s2696_s12   ;;  %s2696_s12 = sphi %s2760_s12, %s3863_s12   ;;  %s2692_s11 = sphi %s2758_s11, %s3862_s11   ;;  %s2688_s10 = sphi %s2756_s10, %s3861_s10   ;;  %s2684_s30 = sphi %s2754_s30, %s3860_s30  }
   0x4   : > { %s2779_s15 = sadd.s32 1, %s2696_s12   ;;  %s223_s16 = sadd.s32 1, %s2692_s11 }
   0x5   : > { %s220_s17 = ssub.s32 %s2696_s12, %s2779_s15  ;;  %p233_p0 = scmp.ne.s32.totalorder %s2692_s11, %s2688_s10 }
   0x6   : > { %p221_p1 = scmp.eq.s32.totalorder %s220_s17, 0  ;;  %p234_p2 = scmp.eq.s32.totalorder %s2775_s13, 1 }
   0x7   : > { %p239_p3 = scmp.ne.s32.totalorder %s2688_s10, %s2684_s30  ;;  %p240_p4 = scmp.eq.s32.totalorder %s1915_s14, 1 }
   0x8   : > { %s2790_s18 = scalar_select %p221_p1, %s2692_s11, %s223_s16  }
   0x9   : > { %p2792_p5 = por %p234_p2, %p233_p0  ;;  %p2796_p6 = por %p240_p4, %p239_p3 }
   0xa   : > { %p1918_p7 = scmp.ge.s32.totalorder %s2696_s12, 1  ;;  %p290_p8 = scmp.lt.s32.totalorder %s2696_s12, 3 }
   0xc   : > { %p291_p9 = pnand %p1918_p7, %p290_p8 }
   0xd   : > { %p326_p10 = scmp.lt.s32.totalorder (!%p291_p9), %s2775_s13, 1  ;;  %s2700_s26 = smov (!%p291_p9), 32  }
   0xe   : > { %294 = sbr.rel (%p291_p9) target bundleno = 1323 (0x52b), region = 56  ;;  %s2702_s22 = smov (!%p291_p9), 96  }
   0xf   : > { %s1985_s14 = sshll.u32 (!%p291_p9), %s2775_s13, 7 }
  0x10   : > { %s3813_s23 = scalar_lea.hbm (!%p291_p9), %s3857_s9, %s1985_s14 }
  0x13   : > { %v384_v0 = vld [vmem:[%s3849_s1 + $0x20] sm:$0xff]  ;;  %v2698_v1 = vmov 0.0   ;;  %v383_v2 = vld [vmem:[%s3849_s1 + $0x18] sm:$0xff]  ;;  %vm2699_vm0 = vmmov 0   ;;  %s327_s25 = scalar_select %p326_p10, %s2775_s13, 1  ;;  %v382_v3 = vld [vmem:[%s3849_s1 + $0x10] sm:$0xff] }
  0x14   : > { %2210 = vmatprep.subr.mxu0 %v2698_v1  ;;  %2220 = vmatprep.mubr.msk.f32.mxu0 %vm2699_vm0, %v2698_v1  ;;  %v381_v4 = vld [vmem:[%s3849_s1 + $0x8] sm:$0xff]  ;;  %v380_v5 = vld [vmem:[%s3849_s1] sm:$0xff]  ;;  %vm392_vm1 = vcmask 326656   ;;  %vm923_vm2 = vcmask 261120   ;;  %vm925_vm3 = vcmask 523264   ;;  %vm927_vm4 = vcmask 785408  }
  0x15   : > { %2211 = vmatpush3.msra.mxu0 %v384_v0  ;;  %s2456_s28 = smul.u32 392, %s327_s25 }
  0x16   : > { %2212 = vmatprep.subr.mxu0 %v2698_v1 }
  0x17   : > { %2213 = vmatpush3.msra.mxu0 %v383_v2  ;;  %s2824_s21 = scalar_lea.vmem %s3848_s0, %s2456_s28  ;;  %s2703_s28 = smov [#allocation2]  }
  0x18   : > { %2214 = vmatprep.subr.mxu0 %v2698_v1  ;;  %v331_v6 = vld [vmem:[%s2824_s21] sm:$0xff]  ;;  %v332_v7 = vld [vmem:[%s2824_s21 + $0x8] sm:$0xff]  ;;  %v333_v8 = vld [vmem:[%s2824_s21 + $0x10] sm:$0xff]  ;;  %s2640_s13 = sshll.u32 %s2703_s28, 4  ;;  %s2641_s13 = int_to_ptr.vmem [resolvable:$false] %s2640_s13 }
  0x19   : > { %2215 = vmatpush3.msra.mxu0 %v382_v3  ;;  %v334_v9 = vld [vmem:[%s2824_s21 + $0x18] sm:$0xff]  ;;  %v335_v10 = vld [vmem:[%s2824_s21 + $0x20] sm:$0xff]  ;;  %v336_v11 = vld [vmem:[%s2824_s21 + $0x28] sm:$0xff] }
  0x1a   : > { %2216 = vmatprep.subr.mxu0 %v2698_v1  ;;  %v337_v12 = vld [vmem:[%s2824_s21 + $0x30] sm:$0xff]  ;;  %v338_v13 = vld [vmem:[%s2824_s21 + $0x38] sm:$0xff]  ;;  %v339_v14 = vld [vmem:[%s2824_s21 + $0x40] sm:$0xff] }
  0x1b   : > { %2217 = vmatpush3.msra.mxu0 %v381_v4  ;;  %v340_v15 = vld [vmem:[%s2824_s21 + $0x48] sm:$0xff]  ;;  %v341_v16 = vld [vmem:[%s2824_s21 + $0x50] sm:$0xff]  ;;  %v342_v17 = vld [vmem:[%s2824_s21 + $0x58] sm:$0xff] }
  0x1c   : > { %2218 = vmatprep.subr.mxu0 %v2698_v1  ;;  %v343_v18 = vld [vmem:[%s2824_s21 + $0x60] sm:$0xff]  ;;  %v344_v19 = vld [vmem:[%s2824_s21 + $0x68] sm:$0xff]  ;;  %v345_v20 = vld [vmem:[%s2824_s21 + $0x70] sm:$0xff] }
  0x1d   : > { %2219 = vmatpush3.msra.mxu0 %v380_v5  ;;  %v346_v21 = vld [vmem:[%s2824_s21 + $0x78] sm:$0xff]  ;;  %v347_v22 = vld [vmem:[%s2824_s21 + $0x80] sm:$0xff]  ;;  %v348_v23 = vld [vmem:[%s2824_s21 + $0x88] sm:$0xff] }
  0x1e   : > { %2221 = vmatmul.mubr.msk.f32.vlgmr.msra.gmra.mxu0 %vm392_vm1, %v331_v6  ;;  %v349_v24 = vld [vmem:[%s2824_s21 + $0x90] sm:$0xff]  ;;  %v350_v25 = vld [vmem:[%s2824_s21 + $0x98] sm:$0xff]  ;;  %v351_v26 = vld [vmem:[%s2824_s21 + $0xa0] sm:$0xff] }
  0x1f   : > { %2223 = vmatprep.mubr.msk.f32.mxu0 %vm2699_vm0, %v2698_v1  ;;  %v352_v27 = vld [vmem:[%s2824_s21 + $0xa8] sm:$0xff]  ;;  %v353_v28 = vld [vmem:[%s2824_s21 + $0xb0] sm:$0xff]  ;;  %v354_v29 = vld [vmem:[%s2824_s21 + $0xb8] sm:$0xff] }
  0x20   : > { %v355_v30 = vld [vmem:[%s2824_s21 + $0xc0] sm:$0xff]  ;;  %v356_v31 = vld [vmem:[%s2824_s21 + $0xc8] sm:$0xff]  ;;  %v357_v32 = vld [vmem:[%s2824_s21 + $0xd0] sm:$0xff] }
  0x21   : > { %v358_v33 = vld [vmem:[%s2824_s21 + $0xd8] sm:$0xff]  ;;  %v359_v34 = vld [vmem:[%s2824_s21 + $0xe0] sm:$0xff]  ;;  %v360_v35 = vld [vmem:[%s2824_s21 + $0xe8] sm:$0xff] }
  0x22   : > { %2224 = vmatmul.mubr.msk.f32.gmra.mxu0 %vm392_vm1, %v332_v7  ;;  %v361_v36 = vld [vmem:[%s2824_s21 + $0xf0] sm:$0xff]  ;;  %v362_v37 = vld [vmem:[%s2824_s21 + $0xf8] sm:$0xff]  ;;  %v363_v38 = vld [vmem:[%s2824_s21 + $0x100] sm:$0xff] }
  0x23   : > { %2226 = vmatprep.mubr.msk.f32.mxu0 %vm2699_vm0, %v2698_v1  ;;  %v364_v39 = vld [vmem:[%s2824_s21 + $0x108] sm:$0xff]  ;;  %v365_v40 = vld [vmem:[%s2824_s21 + $0x110] sm:$0xff]  ;;  %v366_v41 = vld [vmem:[%s2824_s21 + $0x118] sm:$0xff] }
  0x24   : > { %v367_v42 = vld [vmem:[%s2824_s21 + $0x120] sm:$0xff]  ;;  %v368_v43 = vld [vmem:[%s2824_s21 + $0x128] sm:$0xff]  ;;  %v369_v44 = vld [vmem:[%s2824_s21 + $0x130] sm:$0xff] }
  0x25   : > { %v370_v45 = vld [vmem:[%s2824_s21 + $0x138] sm:$0xff]  ;;  %v371_v46 = vld [vmem:[%s2824_s21 + $0x140] sm:$0xff]  ;;  %v372_v47 = vld [vmem:[%s2824_s21 + $0x148] sm:$0xff] }
  0x26   : > { %2227 = vmatmul.mubr.msk.f32.gmra.mxu0 %vm392_vm1, %v333_v8  ;;  %v373_v48 = vld [vmem:[%s2824_s21 + $0x150] sm:$0xff]  ;;  %v374_v49 = vld [vmem:[%s2824_s21 + $0x158] sm:$0xff]  ;;  %v375_v50 = vld [vmem:[%s2824_s21 + $0x160] sm:$0xff] }
  0x27   : > { %2229 = vmatprep.mubr.msk.f32.mxu0 %vm2699_vm0, %v2698_v1  ;;  %v376_v51 = vld [vmem:[%s2824_s21 + $0x168] sm:$0xff]  ;;  %v377_v52 = vld [vmem:[%s2824_s21 + $0x170] sm:$0xff]  ;;  %v378_v53 = vld [vmem:[%s2824_s21 + $0x178] sm:$0xff] }
  0x28   : > { %v379_v4 = vld [vmem:[%s2824_s21 + $0x180] sm:$0xff]  ;;  %v1175_v5 = vld [vmem:[%s3851_s3 + $0xf8] sm:$0xff]  ;;  %v1174_v8 = vld [vmem:[%s3851_s3 + $0xf0] sm:$0xff]  ;;  %s2701_s21 = smov 64  }
  0x29   : > { %2042 = vmatprep.subr.mxu1 %v1175_v5  ;;  %v1159_v7 = vld [vmem:[%s3851_s3 + $0x78] sm:$0xff] }
  0x2a   : > { %2230 = vmatmul.mubr.msk.f32.gmra.mxu0 %vm392_vm1, %v334_v9  ;;  %2043 = vmatpush3.msra.mxu1 %v1159_v7  ;;  %v1160_v7 = vld [vmem:[%s3851_s3 + $0x80] sm:$0xff] }
  0x2b   : > { %2232 = vmatprep.mubr.msk.f32.mxu0 %vm2699_vm0, %v2698_v1  ;;  %2044 = vmatprep.subr.mxu1 %v1174_v8 }
  0x2e   : > { %2233 = vmatmul.mubr.msk.f32.gmra.mxu0 %vm392_vm1, %v335_v10  ;;  %v1158_v10 = vld [vmem:[%s3851_s3 + $0x70] sm:$0xff] }
  0x2f   : > { %2235 = vmatprep.mubr.msk.f32.mxu0 %vm2699_vm0, %v2698_v1  ;;  %2045 = vmatpush3.msra.mxu1 %v1158_v10  ;;  %v1144_v10 = vld [vmem:[%s3851_s3] sm:$0xff] }
  0x32   : > { %2236 = vmatmul.mubr.msk.f32.gmra.mxu0 %vm392_vm1, %v336_v11  ;;  %v1173_v11 = vld [vmem:[%s3851_s3 + $0xe8] sm:$0xff] }
  0x33   : > { %2238 = vmatprep.mubr.msk.f32.mxu0 %vm2699_vm0, %v2698_v1  ;;  %2046 = vmatprep.subr.mxu1 %v1173_v11 }
  0x36   : > { %2239 = vmatmul.mubr.msk.f32.gmra.mxu0 %vm392_vm1, %v337_v12 }
  0x37   : > { %2241 = vmatprep.mubr.msk.f32.mxu0 %vm2699_vm0, %v2698_v1 }
  0x3a   : > { %2242 = vmatmul.mubr.msk.f32.gmra.mxu0 %vm392_vm1, %v338_v13  ;;  %v1157_v13 = vld [vmem:[%s3851_s3 + $0x68] sm:$0xff] }
  0x3b   : > { %2244 = vmatprep.mubr.msk.f32.mxu0 %vm2699_vm0, %v2698_v1  ;;  %2047 = vmatpush3.msra.mxu1 %v1157_v13 }
  0x3e   : > { %2245 = vmatmul.mubr.msk.f32.gmra.mxu0 %vm392_vm1, %v339_v14  ;;  %v1172_v14 = vld [vmem:[%s3851_s3 + $0xe0] sm:$0xff] }
  0x3f   : > { %2247 = vmatprep.mubr.msk.f32.mxu0 %vm2699_vm0, %v2698_v1  ;;  %2048 = vmatprep.subr.mxu1 %v1172_v14 }
  0x42   : > { %2248 = vmatmul.mubr.msk.f32.gmra.mxu0 %vm392_vm1, %v340_v15 }
  0x43   : > { %2250 = vmatprep.mubr.msk.f32.mxu0 %vm2699_vm0, %v2698_v1 }
  0x46   : > { %2251 = vmatmul.mubr.msk.f32.gmra.mxu0 %vm392_vm1, %v341_v16  ;;  %v1156_v16 = vld [vmem:[%s3851_s3 + $0x60] sm:$0xff] }
  0x47   : > { %2253 = vmatprep.mubr.msk.f32.mxu0 %vm2699_vm0, %v2698_v1  ;;  %2049 = vmatpush3.msra.mxu1 %v1156_v16 }
  0x4a   : > { %2254 = vmatmul.mubr.msk.f32.gmra.mxu0 %vm392_vm1, %v342_v17  ;;  %v1171_v17 = vld [vmem:[%s3851_s3 + $0xd8] sm:$0xff] }
  0x4b   : > { %2256 = vmatprep.mubr.msk.f32.mxu0 %vm2699_vm0, %v2698_v1  ;;  %2050 = vmatprep.subr.mxu1 %v1171_v17 }
  0x4e   : > { %2257 = vmatmul.mubr.msk.f32.gmra.mxu0 %vm392_vm1, %v343_v18  ;;  %v3069_v18 = vld [vmem:[%s3850_s2] ss:$0 sm:$0xff] }
  0x4f   : > { %2259 = vmatprep.mubr.msk.f32.mxu0 %vm2699_vm0, %v2698_v1 }
  0x52   : > { %2260 = vmatmul.mubr.msk.f32.gmra.mxu0 %vm392_vm1, %v344_v19 }
  0x53   : > { %2262 = vmatprep.mubr.msk.f32.mxu0 %vm2699_vm0, %v2698_v1 }
  0x56   : > { %2263 = vmatmul.mubr.msk.f32.gmra.mxu0 %vm392_vm1, %v345_v20  ;;  %v1155_v20 = vld [vmem:[%s3851_s3 + $0x58] sm:$0xff] }
  0x57   : > { %2265 = vmatprep.mubr.msk.f32.mxu0 %vm2699_vm0, %v2698_v1  ;;  %2051 = vmatpush3.msra.mxu1 %v1155_v20 }
  0x5a   : > { %2266 = vmatmul.mubr.msk.f32.gmra.mxu0 %vm392_vm1, %v346_v21 }
  0x5b   : > { %2268 = vmatprep.mubr.msk.f32.mxu0 %vm2699_vm0, %v2698_v1 }
  0x5e   : > { %2269 = vmatmul.mubr.msk.f32.gmra.mxu0 %vm392_vm1, %v347_v22  ;;  %v1170_v22 = vld [vmem:[%s3851_s3 + $0xd0] sm:$0xff] }
  0x5f   : > { %2271 = vmatprep.mubr.msk.f32.mxu0 %vm2699_vm0, %v2698_v1  ;;  %2052 = vmatprep.subr.mxu1 %v1170_v22 }
  0x62   : > { %2272 = vmatmul.mubr.msk.f32.gmra.mxu0 %vm392_vm1, %v348_v23 }
  0x63   : > { %2274 = vmatprep.mubr.msk.f32.mxu0 %vm2699_vm0, %v2698_v1 }
  0x66   : > { %2275 = vmatmul.mubr.msk.f32.gmra.mxu0 %vm392_vm1, %v349_v24  ;;  %v1154_v24 = vld [vmem:[%s3851_s3 + $0x50] sm:$0xff] }
  0x67   : > { %2277 = vmatprep.mubr.msk.f32.mxu0 %vm2699_vm0, %v2698_v1  ;;  %2053 = vmatpush3.msra.mxu1 %v1154_v24 }
  0x6a   : > { %2278 = vmatmul.mubr.msk.f32.gmra.mxu0 %vm392_vm1, %v350_v25 }
  0x6b   : > { %2280 = vmatprep.mubr.msk.f32.mxu0 %vm2699_vm0, %v2698_v1 }
  0x6e   : > { %2281 = vmatmul.mubr.msk.f32.gmra.mxu0 %vm392_vm1, %v351_v26  ;;  %v1169_v26 = vld [vmem:[%s3851_s3 + $0xc8] sm:$0xff] }
  0x6f   : > { %2283 = vmatprep.mubr.msk.f32.mxu0 %vm2699_vm0, %v2698_v1  ;;  %2054 = vmatprep.subr.mxu1 %v1169_v26 }
  0x72   : > { %2284 = vmatmul.mubr.msk.f32.gmra.mxu0 %vm392_vm1, %v352_v27 }
  0x73   : > { %2286 = vmatprep.mubr.msk.f32.mxu0 %vm2699_vm0, %v2698_v1 }
  0x76   : > { %2287 = vmatmul.mubr.msk.f32.gmra.mxu0 %vm392_vm1, %v353_v28  ;;  %v1153_v28 = vld [vmem:[%s3851_s3 + $0x48] sm:$0xff] }
  0x77   : > { %2289 = vmatprep.mubr.msk.f32.mxu0 %vm2699_vm0, %v2698_v1  ;;  %2055 = vmatpush3.msra.mxu1 %v1153_v28 }
  0x7a   : > { %2290 = vmatmul.mubr.msk.f32.gmra.mxu0 %vm392_vm1, %v354_v29 }
  0x7b   : > { %2292 = vmatprep.mubr.msk.f32.mxu0 %vm2699_vm0, %v2698_v1 }
  0x7e   : > { %2293 = vmatmul.mubr.msk.f32.gmra.mxu0 %vm392_vm1, %v355_v30 }
  0x7f   : > { %2295 = vmatprep.mubr.msk.f32.mxu0 %vm2699_vm0, %v2698_v1 }
  0x82   : > { %2296 = vmatmul.mubr.msk.f32.gmra.mxu0 %vm392_vm1, %v356_v31  ;;  %v1168_v31 = vld [vmem:[%s3851_s3 + $0xc0] sm:$0xff] }
  0x83   : > { %2298 = vmatprep.mubr.msk.f32.mxu0 %vm2699_vm0, %v2698_v1  ;;  %2056 = vmatprep.subr.mxu1 %v1168_v31 }
  0x86   : > { %2299 = vmatmul.mubr.msk.f32.gmra.mxu0 %vm392_vm1, %v357_v32 }
  0x87   : > { %2301 = vmatprep.mubr.msk.f32.mxu0 %vm2699_vm0, %v2698_v1 }
  0x8a   : > { %2302 = vmatmul.mubr.msk.f32.gmra.mxu0 %vm392_vm1, %v358_v33  ;;  %v1152_v33 = vld [vmem:[%s3851_s3 + $0x40] sm:$0xff] }
  0x8b   : > { %2304 = vmatprep.mubr.msk.f32.mxu0 %vm2699_vm0, %v2698_v1  ;;  %2057 = vmatpush3.msra.mxu1 %v1152_v33 }
  0x8e   : > { %2305 = vmatmul.mubr.msk.f32.gmra.mxu0 %vm392_vm1, %v359_v34 }
  0x8f   : > { %2307 = vmatprep.mubr.msk.f32.mxu0 %vm2699_vm0, %v2698_v1 }
  0x92   : > { %2308 = vmatmul.mubr.msk.f32.gmra.mxu0 %vm392_vm1, %v360_v35  ;;  %v1167_v35 = vld [vmem:[%s3851_s3 + $0xb8] sm:$0xff] }
  0x93   : > { %2310 = vmatprep.mubr.msk.f32.mxu0 %vm2699_vm0, %v2698_v1  ;;  %2058 = vmatprep.subr.mxu1 %v1167_v35 }
  0x96   : > { %2311 = vmatmul.mubr.msk.f32.gmra.mxu0 %vm392_vm1, %v361_v36 }
  0x97   : > { %2313 = vmatprep.mubr.msk.f32.mxu0 %vm2699_vm0, %v2698_v1 }
  0x9a   : > { %2314 = vmatmul.mubr.msk.f32.gmra.mxu0 %vm392_vm1, %v362_v37  ;;  %v1151_v37 = vld [vmem:[%s3851_s3 + $0x38] sm:$0xff] }
  0x9b   : > { %2316 = vmatprep.mubr.msk.f32.mxu0 %vm2699_vm0, %v2698_v1  ;;  %2059 = vmatpush3.msra.mxu1 %v1151_v37 }
  0x9e   : > { %2317 = vmatmul.mubr.msk.f32.gmra.mxu0 %vm392_vm1, %v363_v38 }
  0x9f   : > { %2319 = vmatprep.mubr.msk.f32.mxu0 %vm2699_vm0, %v2698_v1 }
  0xa2   : > { %2320 = vmatmul.mubr.msk.f32.gmra.mxu0 %vm392_vm1, %v364_v39  ;;  %v1166_v39 = vld [vmem:[%s3851_s3 + $0xb0] sm:$0xff] }
  0xa3   : > { %2322 = vmatprep.mubr.msk.f32.mxu0 %vm2699_vm0, %v2698_v1  ;;  %2060 = vmatprep.subr.mxu1 %v1166_v39 }
  0xa6   : > { %2323 = vmatmul.mubr.msk.f32.gmra.mxu0 %vm392_vm1, %v365_v40 }
  0xa7   : > { %2325 = vmatprep.mubr.msk.f32.mxu0 %vm2699_vm0, %v2698_v1 }
  0xaa   : > { %2326 = vmatmul.mubr.msk.f32.gmra.mxu0 %vm392_vm1, %v366_v41  ;;  %v1150_v41 = vld [vmem:[%s3851_s3 + $0x30] sm:$0xff] }
  0xab   : > { %2328 = vmatprep.mubr.msk.f32.mxu0 %vm2699_vm0, %v2698_v1  ;;  %2061 = vmatpush3.msra.mxu1 %v1150_v41 }
  0xae   : > { %2329 = vmatmul.mubr.msk.f32.gmra.mxu0 %vm392_vm1, %v367_v42 }
  0xaf   : > { %2331 = vmatprep.mubr.msk.f32.mxu0 %vm2699_vm0, %v2698_v1 }
  0xb2   : > { %2332 = vmatmul.mubr.msk.f32.gmra.mxu0 %vm392_vm1, %v368_v43  ;;  %v1165_v43 = vld [vmem:[%s3851_s3 + $0xa8] sm:$0xff] }
  0xb3   : > { %2334 = vmatprep.mubr.msk.f32.mxu0 %vm2699_vm0, %v2698_v1  ;;  %2062 = vmatprep.subr.mxu1 %v1165_v43 }
  0xb6   : > { %2335 = vmatmul.mubr.msk.f32.gmra.mxu0 %vm392_vm1, %v369_v44 }
  0xb7   : > { %2337 = vmatprep.mubr.msk.f32.mxu0 %vm2699_vm0, %v2698_v1 }
  0xba   : > { %2338 = vmatmul.mubr.msk.f32.gmra.mxu0 %vm392_vm1, %v370_v45  ;;  %v1149_v45 = vld [vmem:[%s3851_s3 + $0x28] sm:$0xff] }
  0xbb   : > { %2340 = vmatprep.mubr.msk.f32.mxu0 %vm2699_vm0, %v2698_v1  ;;  %2063 = vmatpush3.msra.mxu1 %v1149_v45 }
  0xbe   : > { %2341 = vmatmul.mubr.msk.f32.gmra.mxu0 %vm392_vm1, %v371_v46 }
  0xbf   : > { %2343 = vmatprep.mubr.msk.f32.mxu0 %vm2699_vm0, %v2698_v1 }
  0xc2   : > { %2344 = vmatmul.mubr.msk.f32.gmra.mxu0 %vm392_vm1, %v372_v47 }
  0xc3   : > { %2346 = vmatprep.mubr.msk.f32.mxu0 %vm2699_vm0, %v2698_v1 }
  0xc6   : > { %2347 = vmatmul.mubr.msk.f32.gmra.mxu0 %vm392_vm1, %v373_v48  ;;  %v1164_v48 = vld [vmem:[%s3851_s3 + $0xa0] sm:$0xff] }
  0xc7   : > { %2349 = vmatprep.mubr.msk.f32.mxu0 %vm2699_vm0, %v2698_v1  ;;  %2064 = vmatprep.subr.mxu1 %v1164_v48 }
  0xca   : > { %2350 = vmatmul.mubr.msk.f32.gmra.mxu0 %vm392_vm1, %v374_v49 }
  0xcb   : > { %2352 = vmatprep.mubr.msk.f32.mxu0 %vm2699_vm0, %v2698_v1 }
  0xce   : > { %2353 = vmatmul.mubr.msk.f32.gmra.mxu0 %vm392_vm1, %v375_v50  ;;  %v1148_v50 = vld [vmem:[%s3851_s3 + $0x20] sm:$0xff] }
  0xcf   : > { %2355 = vmatprep.mubr.msk.f32.mxu0 %vm2699_vm0, %v2698_v1  ;;  %2065 = vmatpush3.msra.mxu1 %v1148_v50 }
  0xd2   : > { %2356 = vmatmul.mubr.msk.f32.gmra.mxu0 %vm392_vm1, %v376_v51 }
  0xd3   : > { %2358 = vmatprep.mubr.msk.f32.mxu0 %vm2699_vm0, %v2698_v1 }
  0xd6   : > { %2359 = vmatmul.mubr.msk.f32.gmra.mxu0 %vm392_vm1, %v377_v52  ;;  %v1163_v52 = vld [vmem:[%s3851_s3 + $0x98] sm:$0xff] }
  0xd7   : > { %2361 = vmatprep.mubr.msk.f32.mxu0 %vm2699_vm0, %v2698_v1  ;;  %2066 = vmatprep.subr.mxu1 %v1163_v52 }
  0xda   : > { %2362 = vmatmul.mubr.msk.f32.gmra.mxu0 %vm392_vm1, %v378_v53 }
  0xdb   : > { %2364 = vmatprep.mubr.msk.f32.mxu0 %vm2699_vm0, %v2698_v1 }
  0xde   : > { %v3023_v54 = vpop.f32.mrf.mxu0  ;;  %2365 = vmatmul.mubr.msk.f32.gmra.mxu0 %vm392_vm1, %v379_v4 }
  0xe0   : > { %v2222_v55 = vpop.f32.mrf.mxu0 }
  0xe1   : > { %v1147_v55 = vld [vmem:[%s3851_s3 + $0x18] sm:$0xff] }
  0xe2   : > { %v611_v56 = vpop.f32.mrf.mxu0  ;;  %2067 = vmatpush3.msra.mxu1 %v1147_v55 }
  0xe3   : > { %v612_v21 = vadd.f32 %v3069_v18, %v611_v56 }
  0xe4   : > { %v2225_v57 = vpop.f32.mrf.mxu0 }
  0xe5   : > { %v851_v29 = vmax.f32 %v612_v21, 0.0  ;;  %v1162_v57 = vld [vmem:[%s3851_s3 + $0x90] sm:$0xff] }
  0xe6   : > { %v3025_v58 = vpop.f32.mrf.mxu0  ;;  %2068 = vmatprep.subr.mxu1 %v1162_v57 }
  0xe7   : > { %v3159_v4 = vadd.f32 %v3069_v18, %v3025_v58 }
  0xe8   : > { %v2228_v59 = vpop.f32.mrf.mxu0 }
  0xe9   : > { %v852_v13 = vmax.f32 %v3159_v4, 0.0 }
  0xea   : > { %v621_v60 = vpop.f32.mrf.mxu0 }
  0xeb   : > { %v622_v38 = vadd.f32 %v3069_v18, %v621_v60  ;;  %v1146_v60 = vld [vmem:[%s3851_s3 + $0x10] sm:$0xff] }
  0xec   : > { %v2231_v61 = vpop.f32.mrf.mxu0  ;;  %2069 = vmatpush3.msra.mxu1 %v1146_v60 }
  0xed   : > { %v853_v46 = vmax.f32 %v622_v38, 0.0 }
  0xee   : > { %v3027_v62 = vpop.f32.mrf.mxu0 }
  0xef   : > { %v3183_v22 = vadd.f32 %v3069_v18, %v3027_v62 }
  0xf0   : > { %v2234_v63 = vpop.f32.mrf.mxu0 }
  0xf1   : > { %v1161_v63 = vld [vmem:[%s3851_s3 + $0x88] sm:$0xff] }
  0xf2   : > { %v3029_v0 = vpop.f32.mrf.mxu0  ;;  %2070 = vmatprep.subr.mxu1 %v1161_v63 }
  0xf3   : > { %v632_v56 = vadd.f32 %v3069_v18, %v3029_v0 }
  0xf4   : > { %v2237_v2 = vpop.f32.mrf.mxu0 }
  0xf5   : > { %v1145_v2 = vld [vmem:[%s3851_s3 + $0x8] sm:$0xff]  ;;  %v855_v5 = vmax.f32 %v632_v56, 0.0 }
  0xf6   : > { %v3031_v3 = vpop.f32.mrf.mxu0  ;;  %2071 = vmatpush3.msra.mxu1 %v1145_v2 }
  0xf7   : > { %2072 = vmatprep.subr.mxu1 %v1160_v7 }
  0xf8   : > { %v2240_v6 = vpop.f32.mrf.mxu0  ;;  %2073 = vmatpush3.msra.mxu1 %v1144_v10 }
  0xf9   : > { %2367 = vmatprep.subr.mxu1 %v2698_v1 }
  0xfa   : > { %v3044_v9 = vpop.f32.mrf.mxu0 }
  0xfb   : > { %v642_v14 = vadd.f32 %v3069_v18, %v3044_v9 }
  0xfc   : > { %v2243_v12 = vpop.f32.mrf.mxu0 }
  0xfe   : > { %v3058_v15 = vpop.f32.mrf.mxu0 }
 0x100   : > { %v2246_v19 = vpop.f32.mrf.mxu0 }
 0x102   : > { %v651_v23 = vpop.f32.mrf.mxu0 }
 0x103   : > { %v3082_v25 = vadd.f32 %v3069_v18, %v651_v23  ;;  %v857_v23 = vmax.f32 %v642_v14, 0.0 }
 0x104   : > { %v2249_v27 = vpop.f32.mrf.mxu0 }
 0x105   : > { %v859_v30 = vmax.f32 %v3082_v25, 0.0 }
 0x106   : > { %v3094_v32 = vpop.f32.mrf.mxu0 }
 0x107   : > { %v2501_v34 = vpack.i.bf16 %v851_v29, %v859_v30  ;;  %v854_v29 = vmax.f32 %v3183_v22, 0.0 }
 0x108   : > { %v2252_v36 = vpop.f32.mrf.mxu0 }
 0x109   : > { %2502 = vrot.lane.b32.xlu0 %v2501_v34, %s2700_s26  ;;  %v637_v36 = vadd.f32 %v3069_v18, %v3031_v3 }
 0x10a   : > { %v661_v40 = vpop.f32.mrf.mxu0 }
 0x10b   : > { %v3116_v42 = vadd.f32 %v3069_v18, %v661_v40  ;;  %v856_v43 = vmax.f32 %v637_v36, 0.0 }
 0x10c   : > { %v2255_v44 = vpop.f32.mrf.mxu0 }
 0x10d   : > { %v861_v47 = vmax.f32 %v3116_v42, 0.0 }
 0x10e   : > { %v3128_v49 = vpop.f32.mrf.mxu0 }
 0x10f   : > { %v2506_v51 = vpack.i.bf16 %v853_v46, %v861_v47  ;;  %v667_v4 = vadd.f32 %v3069_v18, %v3128_v49 }
 0x110   : > { %v2258_v53 = vpop.f32.mrf.mxu0 }
 0x111   : > { %2507 = vrot.lane.b32.xlu1 %v2506_v51, %s2700_s26 }
 0x112   : > { %v671_v59 = vpop.f32.mrf.mxu0 }
 0x113   : > { %v672_v61 = vadd.f32 %v3069_v18, %v671_v59 }
 0x114   : > { %v2261_v0 = vpop.f32.mrf.mxu0 }
 0x115   : > { %v863_v6 = vmax.f32 %v672_v61, 0.0 }
 0x116   : > { %v676_v8 = vpop.f32.mrf.mxu0 }
 0x117   : > { %v2511_v11 = vpack.i.bf16 %v855_v5, %v863_v6  ;;  %v3168_v12 = vadd.f32 %v3069_v18, %v676_v8 }
 0x118   : > { %v2264_v58 = vpop.f32.mrf.mxu0 }
 0x119   : > { %v864_v16 = vmax.f32 %v3168_v12, 0.0  ;;  %2512 = vrot.lane.b32.xlu0 %v2511_v11, %s2700_s26 }
 0x11a   : > { %v681_v17 = vpop.f32.mrf.mxu0 }
 0x11b   : > { %v2516_v19 = vpack.i.bf16 %v852_v13, %v864_v16  ;;  %v682_v20 = vadd.f32 %v3069_v18, %v681_v17 }
 0x11c   : > { %v2267_v21 = vpop.f32.mrf.mxu0 }
 0x11d   : > { %v865_v24 = vmax.f32 %v682_v20, 0.0  ;;  %2517 = vrot.lane.b32.xlu0 %v2516_v19, %s2701_s21 }
 0x11e   : > { %v686_v9 = vpop.f32.mrf.mxu0 }
 0x11f   : > { %v2521_v26 = vpack.i.bf16 %v857_v23, %v865_v24  ;;  %v687_v27 = vadd.f32 %v3069_v18, %v686_v9 }
 0x120   : > { %v2270_v28 = vpop.f32.mrf.mxu0 }
 0x121   : > { %v3188_v31 = vmax.f32 %v687_v27, 0.0  ;;  %2522 = vrot.lane.b32.xlu1 %v2521_v26, %s2702_s22 }
 0x122   : > { %v691_v33 = vpop.f32.mrf.mxu0 }
 0x123   : > { %v692_v62 = vadd.f32 %v3069_v18, %v691_v33  ;;  %v2526_v34 = vpack.i.bf16 %v854_v29, %v3188_v31 }
 0x124   : > { %v2273_v35 = vpop.f32.mrf.mxu0 }
 0x125   : > { %v867_v37 = vmax.f32 %v692_v62, 0.0  ;;  %2527 = vrot.lane.b32.xlu0 %v2526_v34, %s2701_s21 }
 0x126   : > { %v696_v38 = vpop.f32.mrf.mxu0 }
 0x127   : > { %v2531_v39 = vpack.i.bf16 %v859_v30, %v867_v37  ;;  %v697_v40 = vadd.f32 %v3069_v18, %v696_v38 }
 0x128   : > { %v2276_v41 = vpop.f32.mrf.mxu0 }
 0x129   : > { %v3201_v44 = vmax.f32 %v697_v40, 0.0  ;;  %2532 = vrot.lane.b32.xlu1 %v2531_v39, %s2702_s22 }
 0x12a   : > { %v701_v45 = vpop.f32.mrf.mxu0 }
 0x12b   : > { %v702_v46 = vadd.f32 %v3069_v18, %v701_v45  ;;  %v2536_v3 = vpack.i.bf16 %v856_v43, %v3201_v44 }
 0x12c   : > { %v2279_v48 = vpop.f32.mrf.mxu0 }
 0x12d   : > { %v869_v50 = vmax.f32 %v702_v46, 0.0  ;;  %2537 = vrot.lane.b32.xlu1 %v2536_v3, %s2701_s21 }
 0x12e   : > { %v706_v51 = vpop.f32.mrf.mxu0 }
 0x12f   : > { %v2541_v25 = vpack.i.bf16 %v861_v47, %v869_v50  ;;  %v3238_v43 = vadd.f32 %v3069_v18, %v706_v51 }
 0x130   : > { %v2282_v30 = vpop.f32.mrf.mxu0 }
 0x131   : > { %2542 = vrot.lane.b32.xlu0 %v2541_v25, %s2702_s22 }
 0x132   : > { %v711_v52 = vpop.f32.mrf.mxu0 }
 0x133   : > { %v712_v19 = vadd.f32 %v3069_v18, %v711_v52  ;;  %v870_v52 = vmax.f32 %v3238_v43, 0.0 }
 0x134   : > { %v2285_v53 = vpop.f32.mrf.mxu0 }
 0x136   : > { %v3210_v55 = vpop.f32.mrf.mxu0 }
 0x138   : > { %v2288_v56 = vpop.f32.mrf.mxu0 }
 0x13a   : > { %v721_v57 = vpop.f32.mrf.mxu0 }
 0x13b   : > { %v722_v59 = vadd.f32 %v3069_v18, %v721_v57 }
 0x13c   : > { %v2291_v60 = vpop.f32.mrf.mxu0 }
 0x13d   : > { %v873_v61 = vmax.f32 %v722_v59, 0.0 }
 0x13e   : > { %v3213_v63 = vpop.f32.mrf.mxu0 }
 0x13f   : > { %v2546_v0 = vpack.i.bf16 %v865_v24, %v873_v61  ;;  %v871_v24 = vmax.f32 %v712_v19, 0.0 }
 0x140   : > { %v2294_v2 = vpop.f32.mrf.mxu0 }
 0x141   : > { %2547 = vrot.lane.b32.xlu1 %v2546_v0, %s2700_s26 }
 0x142   : > { %v731_v42 = vpop.f32.mrf.mxu0 }
 0x143   : > { %v732_v47 = vadd.f32 %v3069_v18, %v731_v42 }
 0x144   : > { %v2297_v5 = vpop.f32.mrf.mxu0 }
 0x145   : > { %v875_v6 = vmax.f32 %v732_v47, 0.0 }
 0x146   : > { %v3217_v7 = vpop.f32.mrf.mxu0 }
 0x147   : > { %v2551_v8 = vpack.i.bf16 %v867_v37, %v875_v6 }
 0x148   : > { %v2300_v10 = vpop.f32.mrf.mxu0 }
 0x149   : > { %2552 = vrot.lane.b32.xlu0 %v2551_v8, %s2700_s26 }
 0x14a   : > { %v741_v11 = vpop.f32.mrf.mxu0 }
 0x14b   : > { %v742_v28 = vadd.f32 %v3069_v18, %v741_v11 }
 0x14c   : > { %v2303_v58 = vpop.f32.mrf.mxu0 }
 0x14d   : > { %v877_v38 = vmax.f32 %v742_v28, 0.0 }
 0x14e   : > { %v746_v14 = vpop.f32.mrf.mxu0 }
 0x14f   : > { %v3223_v9 = vadd.f32 %v3069_v18, %v746_v14  ;;  %v2566_v3 = vpack.i.bf16 %v869_v50, %v877_v38 }
 0x150   : > { %v2306_v17 = vpop.f32.mrf.mxu0 }
 0x151   : > { %v878_v35 = vmax.f32 %v3223_v9, 0.0 }
 0x152   : > { %v751_v20 = vpop.f32.mrf.mxu0 }
 0x153   : > { %v752_v21 = vadd.f32 %v3069_v18, %v751_v20 }
 0x154   : > { %v2309_v23 = vpop.f32.mrf.mxu0 }
 0x155   : > { %v879_v26 = vmax.f32 %v752_v21, 0.0 }
 0x156   : > { %v756_v27 = vpop.f32.mrf.mxu0 }
 0x157   : > { %v2556_v33 = vpack.i.bf16 %v871_v24, %v879_v26  ;;  %v757_v62 = vadd.f32 %v3069_v18, %v756_v27 }
 0x158   : > { %v2312_v34 = vpop.f32.mrf.mxu0 }
 0x159   : > { %v3228_v36 = vmax.f32 %v757_v62, 0.0  ;;  %2557 = vrot.lane.b32.xlu1 %v2556_v33, %s2702_s22 }
 0x15a   : > { %v761_v37 = vpop.f32.mrf.mxu0 }
 0x15b   : > { %v3232_v39 = vadd.f32 %v3069_v18, %v761_v37  ;;  %v2561_v40 = vpack.i.bf16 %v3228_v36, %v878_v35 }
 0x15c   : > { %v2315_v41 = vpop.f32.mrf.mxu0 }
 0x15d   : > { %v881_v45 = vmax.f32 %v3232_v39, 0.0  ;;  %2562 = vrot.lane.b32.xlu0 %v2561_v40, %s2701_s21 }
 0x15e   : > { %v766_v46 = vpop.f32.mrf.mxu0 }
 0x15f   : > { %v2571_v48 = vpack.i.bf16 %v873_v61, %v881_v45  ;;  %v767_v25 = vadd.f32 %v3069_v18, %v766_v46 }
 0x160   : > { %v2318_v30 = vpop.f32.mrf.mxu0 }
 0x161   : > { %v3246_v53 = vmax.f32 %v767_v25, 0.0  ;;  %2567 = vrot.lane.b32.xlu0 %v2566_v3, %s2700_s26  ;;  %2572 = vrot.lane.b32.xlu1 %v2571_v48, %s2702_s22  ;;  %v607_v48 = vadd.f32 %v3069_v18, %v3023_v54  ;;  %v647_v25 = vadd.f32 %v3069_v18, %v3058_v15 }
 0x162   : > { %v771_v51 = vpop.f32.mrf.mxu0 }
 0x163   : > { %v3251_v56 = vadd.f32 %v3069_v18, %v771_v51  ;;  %v2576_v50 = vpack.i.bf16 %v870_v52, %v3246_v53 }
 0x164   : > { %v2321_v57 = vpop.f32.mrf.mxu0 }
 0x165   : > { %v883_v59 = vmax.f32 %v3251_v56, 0.0  ;;  %2577 = vrot.lane.b32.xlu1 %v2576_v50, %s2701_s21 }
 0x166   : > { %v3258_v60 = vpop.f32.mrf.mxu0 }
 0x167   : > { %v2581_v61 = vpack.i.bf16 %v875_v6, %v883_v59 }
 0x168   : > { %v2324_v0 = vpop.f32.mrf.mxu0 }
 0x169   : > { %2582 = vrot.lane.b32.xlu0 %v2581_v61, %s2702_s22 }
 0x16a   : > { %v781_v2 = vpop.f32.mrf.mxu0 }
 0x16b   : > { %v782_v34 = vadd.f32 %v3069_v18, %v781_v2 }
 0x16c   : > { %v2327_v42 = vpop.f32.mrf.mxu0 }
 0x16d   : > { %v885_v41 = vmax.f32 %v782_v34, 0.0 }
 0x16e   : > { %v3263_v47 = vpop.f32.mrf.mxu0 }
 0x170   : > { %v2330_v5 = vpop.f32.mrf.mxu0 }
 0x172   : > { %v791_v8 = vpop.f32.mrf.mxu0 }
 0x173   : > { %v3266_v10 = vadd.f32 %v3069_v18, %v791_v8 }
 0x174   : > { %v2333_v11 = vpop.f32.mrf.mxu0 }
 0x175   : > { %v887_v58 = vmax.f32 %v3266_v10, 0.0 }
 0x176   : > { %v3269_v14 = vpop.f32.mrf.mxu0 }
 0x177   : > { %v2586_v6 = vpack.i.bf16 %v879_v26, %v887_v58 }
 0x178   : > { %v2336_v17 = vpop.f32.mrf.mxu0 }
 0x179   : > { %2587 = vrot.lane.b32.xlu1 %v2586_v6, %s2700_s26  ;;  %v850_v6 = vmax.f32 %v607_v48, 0.0  ;;  %v858_v17 = vmax.f32 %v647_v25, 0.0  ;;  %v657_v48 = vadd.f32 %v3069_v18, %v3094_v32  ;;  %v1179_v32 = vld [vmem:[%s3851_s3 + $0x118] sm:$0xff] }
 0x17a   : > { %v801_v19 = vpop.f32.mrf.mxu0 }
 0x17b   : > { %v2503_v33 = vpop.permute.xlu0 %2502  ;;  %v3286_v51 = vadd.f32 %v3069_v18, %v801_v19 }
 0x17c   : > { %v2339_v20 = vpop.f32.mrf.mxu0  ;;  %v2505_v2 = vunpack.i.h.bf16 %v2503_v33  ;;  %v2504_v42 = vunpack.i.l.bf16 %v2503_v33 }
 0x17d   : > { %v889_v20 = vmax.f32 %v3286_v51, 0.0 }
 0x17e   : > { %v3274_v21 = vpop.f32.mrf.mxu0 }
 0x180   : > { %v2342_v23 = vpop.f32.mrf.mxu0 }
 0x182   : > { %v811_v24 = vpop.f32.mrf.mxu0 }
 0x183   : > { %v3288_v50 = vpop.permute.xlu1 %2507  ;;  %v812_v23 = vadd.f32 %v3069_v18, %v811_v24 }
 0x184   : > { %v2345_v27 = vpop.f32.mrf.mxu0 }
 0x186   : > { %v816_v28 = vpop.f32.mrf.mxu0 }
 0x187   : > { %v817_v46 = vadd.f32 %v3069_v18, %v816_v28 }
 0x188   : > { %v2348_v62 = vpop.f32.mrf.mxu0 }
 0x189   : > { %v892_v8 = vmax.f32 %v817_v46, 0.0 }
 0x18a   : > { %v821_v37 = vpop.f32.mrf.mxu0 }
 0x18b   : > { %v822_v38 = vadd.f32 %v3069_v18, %v821_v37  ;;  %v3278_v40 = vpop.permute.xlu0 %2512 }
 0x18c   : > { %v2351_v26 = vpop.f32.mrf.mxu0 }
 0x18d   : > { %v893_v3 = vmax.f32 %v822_v38, 0.0  ;;  %v929_v38 = vsel %vm923_vm2, %v858_v17, %v2504_v42  ;;  %v924_v26 = vsel %vm923_vm2, %v850_v6, %v2505_v2  ;;  %v860_v6 = vmax.f32 %v657_v48, 0.0 }
 0x18e   : > { %v826_v30 = vpop.f32.mrf.mxu0 }
 0x18f   : > { %v2591_v57 = vpack.i.bf16 %v885_v41, %v893_v3  ;;  %v3291_v61 = vadd.f32 %v3069_v18, %v826_v30  ;;  %v2518_v0 = vpop.permute.xlu0 %2517  ;;  %v3304_v41 = vadd.f32 %v3069_v18, %v3258_v60  ;;  %v891_v60 = vmax.f32 %v812_v23, 0.0 }
 0x190   : > { %v2354_v5 = vpop.f32.mrf.mxu0  ;;  %v2520_v11 = vunpack.i.h.bf16 %v2518_v0  ;;  %v2519_v15 = vunpack.i.l.bf16 %v2518_v0 }
 0x191   : > { %v894_v54 = vmax.f32 %v3291_v61, 0.0  ;;  %2592 = vrot.lane.b32.xlu1 %v2591_v57, %s2702_s22  ;;  %v2601_v57 = vpack.i.bf16 %v881_v45, %v889_v20  ;;  %v2510_v5 = vunpack.i.h.bf16 %v3288_v50  ;;  %v884_v45 = vmax.f32 %v3304_v41, 0.0 }
 0x192   : > { %v831_v19 = vpop.f32.mrf.mxu0  ;;  %v930_v24 = vsel %vm925_vm3, %v929_v38, %v2519_v15  ;;  %v926_v3 = vsel %vm925_vm3, %v924_v26, %v2520_v11  ;;  %v1178_v15 = vld [vmem:[%s3851_s3 + $0x110] sm:$0xff]  ;;  %v2606_v17 = vpack.i.bf16 %v883_v59, %v891_v60  ;;  %v1177_v59 = vld [vmem:[%s3851_s3 + $0x108] sm:$0xff] }
 0x193   : > { %v2596_v27 = vpack.i.bf16 %v894_v54, %v892_v8  ;;  %v832_v28 = vadd.f32 %v3069_v18, %v831_v19  ;;  %v2523_v33 = vpop.permute.xlu1 %2522  ;;  %v2509_v8 = vunpack.i.l.bf16 %v3288_v50  ;;  %v955_v56 = vsel %vm923_vm2, %v852_v13, %v2510_v5 }
 0x194   : > { %v2525_v62 = vunpack.i.h.bf16 %v2523_v33  ;;  %v2524_v34 = vunpack.i.l.bf16 %v2523_v33  ;;  %v2357_v37 = vpop.f32.mrf.mxu0 }
 0x195   : > { %v895_v46 = vmax.f32 %v832_v28, 0.0  ;;  %2597 = vrot.lane.b32.xlu0 %v2596_v27, %s2701_s21 }
 0x196   : > { %v836_v25 = vpop.f32.mrf.mxu0  ;;  %v931_v30 = vsel %vm927_vm4, %v930_v24, %v2524_v34  ;;  %v928_v51 = vsel %vm927_vm4, %v926_v3, %v2525_v62  ;;  %v958_v34 = vsel %vm923_vm2, %v860_v6, %v2509_v8  ;;  %v1176_v24 = vld [vmem:[%s3851_s3 + $0x100] sm:$0xff] }
 0x197   : > { %v2611_v0 = vpack.i.bf16 %v887_v58, %v895_v46  ;;  %v3318_v2 = vadd.f32 %v3069_v18, %v836_v25  ;;  %1270 = vmatprep.mubr.f32.mxu1 %v931_v30  ;;  %v3320_v42 = vpop.permute.xlu0 %2527  ;;  %v2515_v25 = vunpack.i.h.bf16 %v3278_v40  ;;  %v2514_v30 = vunpack.i.l.bf16 %v3278_v40 }
 0x198   : > { %v2360_v39 = vpop.f32.mrf.mxu0  ;;  %1271 = vmatmul.mubr.f32.vlgmr.msra.gmra.mxu1 %v928_v51  ;;  %v2530_v58 = vunpack.i.h.bf16 %v3320_v42  ;;  %v2529_v11 = vunpack.i.l.bf16 %v3320_v42 }
 0x199   : > { %v896_v10 = vmax.f32 %v3318_v2, 0.0  ;;  %2602 = vrot.lane.b32.xlu0 %v2601_v57, %s2700_s26  ;;  %2612 = vrot.lane.b32.xlu1 %v2611_v0, %s2702_s22  ;;  %v862_v57 = vmax.f32 %v667_v4, 0.0  ;;  %v984_v5 = vsel %vm923_vm2, %v854_v29, %v2515_v25  ;;  %v727_v29 = vadd.f32 %v3069_v18, %v3213_v63  ;;  %v1486_v2 = vld [vmem:[%s3853_s5 + $0xf8] sm:$0xff] }
 0x19a   : > { %v841_v50 = vpop.f32.mrf.mxu0  ;;  %2368 = vmatpush3.msra.mxu1 %v1179_v32  ;;  %v959_v38 = vsel %vm925_vm3, %v958_v34, %v2529_v11  ;;  %v956_v26 = vsel %vm925_vm3, %v955_v56, %v2530_v58 }
 0x19b   : > { %v2616_v19 = vpack.i.bf16 %v884_v45, %v896_v10  ;;  %v842_v23 = vadd.f32 %v3069_v18, %v841_v50  ;;  %v2533_v27 = vpop.permute.xlu1 %2532  ;;  %2369 = vmatprep.subr.mxu1 %v2698_v1 }
 0x19c   : > { %v2535_v28 = vunpack.i.h.bf16 %v2533_v27  ;;  %v2534_v33 = vunpack.i.l.bf16 %v2533_v27  ;;  %v2363_v62 = vpop.f32.mrf.mxu0  ;;  %2370 = vmatpush3.msra.mxu1 %v1178_v15 }
 0x19d   : > { %v897_v37 = vmax.f32 %v842_v23, 0.0  ;;  %2607 = vrot.lane.b32.xlu0 %v2606_v17, %s2700_s26  ;;  %2617 = vrot.lane.b32.xlu1 %v2616_v19, %s2701_s21  ;;  %v717_v17 = vadd.f32 %v3069_v18, %v3210_v55  ;;  %v874_v55 = vmax.f32 %v727_v29, 0.0 }
 0x19e   : > { %v960_v13 = vsel %vm927_vm4, %v959_v38, %v2534_v33  ;;  %v957_v46 = vsel %vm927_vm4, %v956_v26, %v2535_v28  ;;  %2371 = vmatprep.subr.mxu1 %v2698_v1  ;;  %v3377_v15 = vpop.f32.mrf.mxu0 }
 0x19f   : > { %v2621_v3 = vpack.i.bf16 %v889_v20, %v897_v37  ;;  %1275 = vmatprep.mubr.f32.mxu1 %v960_v13  ;;  %v2538_v48 = vpop.permute.xlu1 %2537  ;;  %2372 = vmatpush3.msra.mxu1 %v1177_v59  ;;  %v987_v20 = vsel %vm923_vm2, %v862_v57, %v2514_v30  ;;  %v872_v28 = vmax.f32 %v717_v17, 0.0  ;;  %v737_v57 = vadd.f32 %v3069_v18, %v3217_v7 }
 0x1a0   : > { %1276 = vmatmul.mubr.f32.gmra.mxu1 %v957_v46  ;;  %2373 = vmatprep.subr.mxu1 %v2698_v1  ;;  %v2540_v49 = vunpack.i.h.bf16 %v2538_v48  ;;  %v2539_v51 = vunpack.i.l.bf16 %v2538_v48  ;;  %v2366_v6 = vpop.f32.mrf.mxu0 }
 0x1a1   : > { %2622 = vrot.lane.b32.xlu0 %v2621_v3, %s2702_s22  ;;  %2374 = vmatpush3.msra.mxu1 %v1176_v24 }
 0x1a2   : > { %v988_v40 = vsel %vm925_vm3, %v987_v20, %v2539_v51  ;;  %v985_v8 = vsel %vm925_vm3, %v984_v5, %v2540_v49  ;;  %2114 = vmatprep.subr.mxu1 %v1486_v2 }
 0x1a3   : > { %v2543_v60 = vpop.permute.xlu0 %2542 }
 0x1a4   : > { %v2545_v0 = vunpack.i.h.bf16 %v2543_v60  ;;  %v2544_v32 = vunpack.i.l.bf16 %v2543_v60 }
 0x1a6   : > { %v989_v39 = vsel %vm927_vm4, %v988_v40, %v2544_v32  ;;  %v986_v58 = vsel %vm927_vm4, %v985_v8, %v2545_v0  ;;  %v876_v8 = vmax.f32 %v737_v57, 0.0 }
 0x1a7   : > { %1280 = vmatprep.mubr.f32.mxu1 %v989_v39 }
 0x1a8   : > { %1281 = vmatmul.mubr.f32.gmra.mxu1 %v986_v58 }
 0x1b3   : > { %v2548_v50 = vpop.permute.xlu1 %2547 }
 0x1b4   : > { %v2550_v19 = vunpack.i.h.bf16 %v2548_v50  ;;  %v2549_v23 = vunpack.i.l.bf16 %v2548_v50 }
 0x1b6   : > { %v1009_v37 = vsel %vm923_vm2, %v864_v16, %v2550_v19  ;;  %v1012_v63 = vsel %vm923_vm2, %v872_v28, %v2549_v23  ;;  %v787_v23 = vadd.f32 %v3069_v18, %v3263_v47 }
 0x1b7   : > { %v1010_v24 = vsel %vm925_vm3, %v1009_v37, %v2529_v11 }
 0x1bb   : > { %v2553_v22 = vpop.permute.xlu0 %2552 }
 0x1bc   : > { %v2554_v33 = vunpack.i.l.bf16 %v2553_v22  ;;  %v2555_v34 = vunpack.i.h.bf16 %v2553_v22 }
 0x1be   : > { %v1036_v3 = vsel %vm923_vm2, %v874_v55, %v2554_v33  ;;  %v1033_v25 = vsel %vm923_vm2, %v3188_v31, %v2555_v34  ;;  %v797_v34 = vadd.f32 %v3069_v18, %v3269_v14  ;;  %v807_v14 = vadd.f32 %v3069_v18, %v3274_v21 }
 0x1bf   : > { %v1034_v60 = vsel %vm925_vm3, %v1033_v25, %v2539_v51 }
 0x1c0   : > { %v888_v47 = vmax.f32 %v797_v34, 0.0  ;;  %v1465_v34 = vld [vmem:[%s3853_s5 + $0x50] sm:$0xff] }
 0x1cb   : > { %v2558_v27 = vpop.permute.xlu1 %2557 }
 0x1cc   : > { %v2560_v56 = vunpack.i.h.bf16 %v2558_v27  ;;  %v2559_v38 = vunpack.i.l.bf16 %v2558_v27 }
 0x1ce   : > { %v1011_v16 = vsel %vm927_vm4, %v1010_v24, %v2560_v56 }
 0x1cf   : > { %v3383_v62 = vpop.permute.xlu0 %2562 }
 0x1d0   : > { %v2564_v59 = vunpack.i.l.bf16 %v3383_v62  ;;  %v2565_v26 = vunpack.i.h.bf16 %v3383_v62  ;;  %v886_v62 = vmax.f32 %v787_v23, 0.0  ;;  %v1483_v23 = vld [vmem:[%s3853_s5 + $0xe0] sm:$0xff] }
 0x1d2   : > { %v1013_v4 = vsel %vm925_vm3, %v1012_v63, %v2564_v59  ;;  %v1037_v49 = vsel %vm925_vm3, %v1036_v3, %v2565_v26 }
 0x1d3   : > { %v2573_v13 = vpop.permute.xlu1 %2572  ;;  %v1014_v46 = vsel %vm927_vm4, %v1013_v4, %v2559_v38  ;;  %v2568_v30 = vpop.permute.xlu0 %2567 }
 0x1d4   : > { %v2575_v12 = vunpack.i.h.bf16 %v2573_v13  ;;  %v2574_v48 = vunpack.i.l.bf16 %v2573_v13  ;;  %1285 = vmatprep.mubr.f32.mxu1 %v1014_v46  ;;  %v2570_v0 = vunpack.i.h.bf16 %v2568_v30  ;;  %v2569_v32 = vunpack.i.l.bf16 %v2568_v30 }
 0x1d5   : > { %1286 = vmatmul.mubr.f32.gmra.mxu1 %v1011_v16 }
 0x1d6   : > { %v1038_v42 = vsel %vm927_vm4, %v1037_v49, %v2574_v48  ;;  %v1035_v20 = vsel %vm927_vm4, %v1034_v60, %v2575_v12  ;;  %v1064_v50 = vsel %vm923_vm2, %v876_v8, %v2569_v32  ;;  %v1061_v7 = vsel %vm923_vm2, %v3201_v44, %v2570_v0 }
 0x1d7   : > { %1290 = vmatprep.mubr.f32.mxu1 %v1038_v42  ;;  %v2578_v11 = vpop.permute.xlu1 %2577 }
 0x1d8   : > { %v2580_v5 = vunpack.i.h.bf16 %v2578_v11  ;;  %v2579_v40 = vunpack.i.l.bf16 %v2578_v11  ;;  %v890_v11 = vmax.f32 %v807_v14, 0.0 }
 0x1d9   : > { %1291 = vmatmul.mubr.f32.gmra.mxu1 %v1035_v20 }
 0x1da   : > { %v1065_v17 = vsel %vm925_vm3, %v1064_v50, %v2579_v40  ;;  %v1062_v51 = vsel %vm925_vm3, %v1061_v7, %v2580_v5 }
 0x1db   : > { %v2583_v39 = vpop.permute.xlu0 %2582 }
 0x1dc   : > { %v2585_v58 = vunpack.i.h.bf16 %v2583_v39  ;;  %v2584_v6 = vunpack.i.l.bf16 %v2583_v39 }
 0x1de   : > { %v1066_v22 = vsel %vm927_vm4, %v1065_v17, %v2584_v6  ;;  %v1063_v19 = vsel %vm927_vm4, %v1062_v51, %v2585_v58 }
 0x1df   : > { %1295 = vmatprep.mubr.f32.mxu1 %v1066_v22 }
 0x1e0   : > { %1296 = vmatmul.mubr.f32.gmra.mxu1 %v1063_v19  ;;  %v1484_v19 = vld [vmem:[%s3853_s5 + $0xe8] sm:$0xff] }
 0x1eb   : > { %v2588_v29 = vpop.permute.xlu1 %2587 }
 0x1ec   : > { %v2590_v27 = vunpack.i.h.bf16 %v2588_v29  ;;  %v2589_v28 = vunpack.i.l.bf16 %v2588_v29  ;;  %v1468_v29 = vld [vmem:[%s3853_s5 + $0x68] sm:$0xff] }
 0x1ee   : > { %v1086_v55 = vsel %vm923_vm2, %v878_v35, %v2590_v27  ;;  %v1089_v63 = vsel %vm923_vm2, %v886_v62, %v2589_v28  ;;  %v1467_v27 = vld [vmem:[%s3853_s5 + $0x60] sm:$0xff]  ;;  %v1482_v28 = vld [vmem:[%s3853_s5 + $0xd8] sm:$0xff]  ;;  %v1481_v62 = vld [vmem:[%s3853_s5 + $0xd0] sm:$0xff] }
 0x1ef   : > { %v1087_v3 = vsel %vm925_vm3, %v1086_v55, %v2565_v26  ;;  %v1463_v55 = vld [vmem:[%s3853_s5 + $0x40] sm:$0xff] }
 0x203   : > { %v2593_v33 = vpop.permute.xlu1 %2592 }
 0x204   : > { %v2595_v59 = vunpack.i.h.bf16 %v2593_v33  ;;  %v2594_v38 = vunpack.i.l.bf16 %v2593_v33  ;;  %v1466_v33 = vld [vmem:[%s3853_s5 + $0x58] sm:$0xff] }
 0x206   : > { %v1088_v9 = vsel %vm927_vm4, %v1087_v3, %v2595_v59  ;;  %v1464_v59 = vld [vmem:[%s3853_s5 + $0x48] sm:$0xff]  ;;  %v1459_v3 = vld [vmem:[%s3853_s5 + $0x20] sm:$0xff] }
 0x207   : > { %v2598_v56 = vpop.permute.xlu0 %2597 }
 0x208   : > { %v2599_v37 = vunpack.i.l.bf16 %v2598_v56  ;;  %v2600_v35 = vunpack.i.h.bf16 %v2598_v56  ;;  %v1480_v56 = vld [vmem:[%s3853_s5 + $0xc8] sm:$0xff] }
 0x20a   : > { %v1090_v4 = vsel %vm925_vm3, %v1089_v63, %v2599_v37  ;;  %v1479_v37 = vld [vmem:[%s3853_s5 + $0xc0] sm:$0xff]  ;;  %v1462_v63 = vld [vmem:[%s3853_s5 + $0x38] sm:$0xff] }
 0x20b   : > { %v2603_v13 = vpop.permute.xlu0 %2602  ;;  %v2613_v46 = vpop.permute.xlu1 %2612  ;;  %v1091_v24 = vsel %vm927_vm4, %v1090_v4, %v2594_v38  ;;  %v1478_v38 = vld [vmem:[%s3853_s5 + $0xb8] sm:$0xff]  ;;  %v1477_v4 = vld [vmem:[%s3853_s5 + $0xb0] sm:$0xff] }
 0x20c   : > { %v2605_v12 = vunpack.i.h.bf16 %v2603_v13  ;;  %v2604_v48 = vunpack.i.l.bf16 %v2603_v13  ;;  %1300 = vmatprep.mubr.f32.mxu1 %v1091_v24  ;;  %v2615_v30 = vunpack.i.h.bf16 %v2613_v46  ;;  %v2614_v49 = vunpack.i.l.bf16 %v2613_v46  ;;  %v1476_v13 = vld [vmem:[%s3853_s5 + $0xa8] sm:$0xff]  ;;  %v1475_v24 = vld [vmem:[%s3853_s5 + $0xa0] sm:$0xff] }
 0x20d   : > { %1301 = vmatmul.mubr.f32.gmra.mxu1 %v1088_v9  ;;  %v1460_v46 = vld [vmem:[%s3853_s5 + $0x28] sm:$0xff] }
 0x20e   : > { %v1113_v16 = vsel %vm923_vm2, %v888_v47, %v2604_v48  ;;  %v1110_v25 = vsel %vm923_vm2, %v3228_v36, %v2605_v12  ;;  %v1461_v47 = vld [vmem:[%s3853_s5 + $0x30] sm:$0xff]  ;;  %v1474_v12 = vld [vmem:[%s3853_s5 + $0x98] sm:$0xff] }
 0x20f   : > { %v2608_v57 = vpop.permute.xlu0 %2607  ;;  %v2618_v42 = vpop.permute.xlu1 %2617  ;;  %v1114_v26 = vsel %vm925_vm3, %v1113_v16, %v2600_v35  ;;  %v1111_v21 = vsel %vm925_vm3, %v1110_v25, %v2579_v40  ;;  %v1458_v48 = vld [vmem:[%s3853_s5 + $0x18] sm:$0xff]  ;;  %v1473_v35 = vld [vmem:[%s3853_s5 + $0x90] sm:$0xff] }
 0x210   : > { %v2610_v60 = vunpack.i.h.bf16 %v2608_v57  ;;  %v2609_v0 = vunpack.i.l.bf16 %v2608_v57  ;;  %v2620_v32 = vunpack.i.h.bf16 %v2618_v42  ;;  %v2619_v20 = vunpack.i.l.bf16 %v2618_v42  ;;  %v1457_v16 = vld [vmem:[%s3853_s5 + $0x10] sm:$0xff] }
 0x211   : > { %v1115_v5 = vsel %vm927_vm4, %v1114_v26, %v2614_v49  ;;  %v1112_v8 = vsel %vm927_vm4, %v1111_v21, %v2615_v30  ;;  %v1472_v30 = vld [vmem:[%s3853_s5 + $0x88] sm:$0xff] }
 0x212   : > { %1305 = vmatprep.mubr.f32.mxu1 %v1115_v5  ;;  %v1141_v39 = vsel %vm923_vm2, %v890_v11, %v2609_v0  ;;  %v1138_v58 = vsel %vm923_vm2, %v3246_v53, %v2610_v60  ;;  %v1971_v5 = vld [vmem:[%s3852_s4] ss:$0 sm:$0xff] }
 0x213   : > { %1306 = vmatmul.mubr.f32.gmra.mxu1 %v1112_v8  ;;  %v2623_v6 = vpop.permute.xlu0 %2622  ;;  %v1142_v40 = vsel %vm925_vm3, %v1141_v39, %v2619_v20  ;;  %v1139_v17 = vsel %vm925_vm3, %v1138_v58, %v2620_v32 }
 0x214   : > { %v2625_v50 = vunpack.i.h.bf16 %v2623_v6  ;;  %v2624_v7 = vunpack.i.l.bf16 %v2623_v6 }
 0x216   : > { %v1143_v51 = vsel %vm927_vm4, %v1142_v40, %v2624_v7  ;;  %v1140_v22 = vsel %vm927_vm4, %v1139_v17, %v2625_v50 }
 0x217   : > { %1310 = vmatprep.mubr.f32.mxu1 %v1143_v51 }
 0x218   : > { %1311 = vmatmul.mubr.f32.gmra.mxu1 %v1140_v22  ;;  %v1456_v22 = vld [vmem:[%s3853_s5 + $0x8] sm:$0xff] }
 0x219   : > { %2375 = vmatprep.mubr.msk.f32.mxu1 %vm2699_vm0, %v2698_v1 }
 0x21c   : > { %2376 = vmatmul.mubr.msk.f32.vlgmr.msra.gmra.mxu1 %vm923_vm2, %v3188_v31  ;;  %v847_v31 = vadd.f32 %v3069_v18, %v3377_v15  ;;  %v1469_v15 = vld [vmem:[%s3853_s5 + $0x70] sm:$0xff] }
 0x21d   : > { %2378 = vmatprep.mubr.msk.f32.mxu1 %vm2699_vm0, %v2698_v1 }
 0x220   : > { %2379 = vmatmul.mubr.msk.f32.gmra.mxu1 %vm923_vm2, %v3201_v44  ;;  %v898_v44 = vmax.f32 %v847_v31, 0.0 }
 0x221   : > { %2381 = vmatprep.mubr.msk.f32.mxu1 %vm2699_vm0, %v2698_v1 }
 0x224   : > { %2382 = vmatmul.mubr.msk.f32.gmra.mxu1 %vm923_vm2, %v870_v52 }
 0x225   : > { %2384 = vmatprep.mubr.msk.f32.mxu1 %vm2699_vm0, %v2698_v1 }
 0x228   : > { %2385 = vmatmul.mubr.msk.f32.gmra.mxu1 %vm923_vm2, %v3228_v36 }
 0x229   : > { %2387 = vmatprep.mubr.msk.f32.mxu1 %vm2699_vm0, %v2698_v1 }
 0x22c   : > { %2388 = vmatmul.mubr.msk.f32.gmra.mxu1 %vm923_vm2, %v3246_v53 }
 0x22d   : > { %2390 = vmatprep.mubr.msk.f32.mxu1 %vm2699_vm0, %v2698_v1 }
 0x230   : > { %2391 = vmatmul.mubr.msk.f32.gmra.mxu1 %vm923_vm2, %v884_v45  ;;  %v1470_v45 = vld [vmem:[%s3853_s5 + $0x78] sm:$0xff] }
 0x231   : > { %2393 = vmatprep.mubr.msk.f32.mxu1 %vm2699_vm0, %v2698_v1  ;;  %2115 = vmatpush3.msra.mxu1 %v1470_v45 }
 0x234   : > { %2394 = vmatmul.mubr.msk.f32.gmra.mxu1 %vm923_vm2, %v894_v54 }
 0x235   : > { %2396 = vmatprep.mubr.msk.f32.mxu1 %vm2699_vm0, %v2698_v1 }
 0x238   : > { %2397 = vmatmul.mubr.msk.f32.gmra.mxu1 %vm923_vm2, %v896_v10  ;;  %v1485_v10 = vld [vmem:[%s3853_s5 + $0xf0] sm:$0xff] }
 0x239   : > { %2399 = vmatprep.mubr.msk.f32.mxu1 %vm2699_vm0, %v2698_v1  ;;  %2116 = vmatprep.subr.mxu1 %v1485_v10 }
 0x23a   : > { %2117 = vmatpush3.msra.mxu1 %v1469_v15 }
 0x23b   : > { %2118 = vmatprep.subr.mxu1 %v1484_v19 }
 0x23c   : > { %2400 = vmatmul.mubr.msk.f32.gmra.mxu1 %vm923_vm2, %v898_v44 }
 0x23d   : > { %2119 = vmatpush3.msra.mxu1 %v1468_v29 }
 0x23e   : > { %2120 = vmatprep.subr.mxu1 %v1483_v23 }
 0x23f   : > { %2121 = vmatpush3.msra.mxu1 %v1467_v27 }
 0x240   : > { %2122 = vmatprep.subr.mxu1 %v1482_v28 }
 0x241   : > { %2123 = vmatpush3.msra.mxu1 %v1466_v33 }
 0x242   : > { %2124 = vmatprep.subr.mxu1 %v1481_v62 }
 0x243   : > { %2125 = vmatpush3.msra.mxu1 %v1465_v34 }
 0x244   : > { %2126 = vmatprep.subr.mxu1 %v1480_v56 }
 0x245   : > { %2127 = vmatpush3.msra.mxu1 %v1464_v59 }
 0x246   : > { %2128 = vmatprep.subr.mxu1 %v1479_v37 }
 0x247   : > { %2129 = vmatpush3.msra.mxu1 %v1463_v55 }
 0x248   : > { %2130 = vmatprep.subr.mxu1 %v1478_v38 }
 0x249   : > { %2131 = vmatpush3.msra.mxu1 %v1462_v63 }
 0x24a   : > { %2132 = vmatprep.subr.mxu1 %v1477_v4 }
 0x24b   : > { %2133 = vmatpush3.msra.mxu1 %v1461_v47 }
 0x24c   : > { %2134 = vmatprep.subr.mxu1 %v1476_v13 }
 0x24d   : > { %2135 = vmatpush3.msra.mxu1 %v1460_v46 }
 0x24e   : > { %2136 = vmatprep.subr.mxu1 %v1475_v24 }
 0x24f   : > { %2137 = vmatpush3.msra.mxu1 %v1459_v3 }
 0x250   : > { %2138 = vmatprep.subr.mxu1 %v1474_v12 }
 0x251   : > { %2139 = vmatpush3.msra.mxu1 %v1458_v48 }
 0x252   : > { %2140 = vmatprep.subr.mxu1 %v1473_v35 }
 0x253   : > { %2141 = vmatpush3.msra.mxu1 %v1457_v16 }
 0x254   : > { %2142 = vmatprep.subr.mxu1 %v1472_v30 }
 0x255   : > { %2143 = vmatpush3.msra.mxu1 %v1456_v22 }
 0x258   : > { %v2074_v36 = vpop.f32.mrf.mxu1 }
 0x25a   : > { %v2075_v43 = vpop.f32.mrf.mxu1 }
 0x25b   : > { %v3482_v52 = vadd.f32 %v2075_v43, %v2074_v36  ;;  %v1471_v36 = vld [vmem:[%s3853_s5 + $0x80] sm:$0xff] }
 0x25c   : > { %2144 = vmatprep.subr.mxu1 %v1471_v36 }
 0x25d   : > { %v1273_v58 = vadd.f32 %v3482_v52, %v1971_v5  ;;  %v1455_v52 = vld [vmem:[%s3853_s5] sm:$0xff] }
 0x25e   : > { %2145 = vmatpush3.msra.mxu1 %v1455_v52  ;;  %v1510_v52 = vld [vmem:[%s3853_s5 + $0x1b8] sm:$0xff] }
 0x260   : > { %v3484_v53 = vpop.f32.mrf.mxu1 }
 0x262   : > { %v3486_v18 = vpop.f32.mrf.mxu1 }
 0x263   : > { %v2079_v17 = vadd.f32 %v3486_v18, %v3484_v53 }
 0x265   : > { %v1278_v53 = vadd.f32 %v2079_v17, %v1971_v5  ;;  %v1512_v17 = vld [vmem:[%s3853_s5 + $0x1c8] sm:$0xff] }
 0x268   : > { %v2080_v61 = vpop.f32.mrf.mxu1 }
 0x26a   : > { %v2081_v54 = vpop.f32.mrf.mxu1 }
 0x26b   : > { %v3488_v41 = vadd.f32 %v2081_v54, %v2080_v61  ;;  %v1518_v61 = vld [vmem:[%s3853_s5 + $0x1f8] sm:$0xff] }
 0x26c   : > { %2149 = vmatprep.subr.mxu1 %v1518_v61  ;;  %v1509_v61 = vld [vmem:[%s3853_s5 + $0x1b0] sm:$0xff] }
 0x26d   : > { %v1283_v44 = vadd.f32 %v3488_v41, %v1971_v5 }
 0x295   : > { %v2083_v14 = vpop.f32.mrf.mxu1 }
 0x297   : > { %v2084_v9 = vpop.f32.mrf.mxu1 }
 0x298   : > { %v2085_v31 = vadd.f32 %v2084_v9, %v2083_v14 }
 0x299   : > { %v2086_v25 = vpop.f32.mrf.mxu1 }
 0x29a   : > { %v1288_v2 = vadd.f32 %v2085_v31, %v1971_v5  ;;  %v1511_v31 = vld [vmem:[%s3853_s5 + $0x1c0] sm:$0xff] }
 0x29b   : > { %v2087_v49 = vpop.f32.mrf.mxu1 }
 0x29c   : > { %v2088_v57 = vadd.f32 %v2087_v49, %v2086_v25 }
 0x29e   : > { %v1293_v23 = vadd.f32 %v2088_v57, %v1971_v5 }
 0x2a0   : > { %v2089_v42 = vpop.f32.mrf.mxu1 }
 0x2a2   : > { %v2090_v26 = vpop.f32.mrf.mxu1 }
 0x2a3   : > { %v2091_v56 = vadd.f32 %v2090_v26, %v2089_v42 }
 0x2a5   : > { %v1298_v63 = vadd.f32 %v2091_v56, %v1971_v5  ;;  %v1487_v56 = vld [vmem:[%s3853_s5 + $0x100] sm:$0xff] }
 0x2cd   : > { %v2092_v21 = vpop.f32.mrf.mxu1 }
 0x2cf   : > { %v2093_v11 = vpop.f32.mrf.mxu1 }
 0x2d0   : > { %v2094_v60 = vadd.f32 %v2093_v11, %v2092_v21 }
 0x2d2   : > { %v1303_v55 = vadd.f32 %v2094_v60, %v1971_v5 }
 0x2d3   : > { %v2095_v0 = vpop.f32.mrf.mxu1 }
 0x2d5   : > { %v2096_v32 = vpop.f32.mrf.mxu1 }
 0x2d6   : > { %v2097_v37 = vadd.f32 %v2096_v32, %v2095_v0  ;;  %v1502_v0 = vld [vmem:[%s3853_s5 + $0x178] sm:$0xff]  ;;  %v1517_v32 = vld [vmem:[%s3853_s5 + $0x1f0] sm:$0xff] }
 0x2d8   : > { %v2098_v20 = vpop.f32.mrf.mxu1  ;;  %v1308_v46 = vadd.f32 %v2097_v37, %v1971_v5  ;;  %v1526_v37 = vld [vmem:[%s3853_s5 + $0x238] sm:$0xff] }
 0x2da   : > { %v2099_v8 = vpop.f32.mrf.mxu1 }
 0x2db   : > { %v2100_v39 = vadd.f32 %v2099_v8, %v2098_v20  ;;  %v1501_v20 = vld [vmem:[%s3853_s5 + $0x170] sm:$0xff]  ;;  %v1500_v8 = vld [vmem:[%s3853_s5 + $0x168] sm:$0xff] }
 0x2dc   : > { %v1382_v6 = vpop.f32.mrf.mxu1 }
 0x2dd   : > { %v1383_v50 = vadd.f32 %v1382_v6, %v1273_v58  ;;  %v1313_v9 = vadd.f32 %v2100_v39, %v1971_v5  ;;  %v1516_v5 = vld [vmem:[%s3853_s5 + $0x1e8] sm:$0xff]  ;;  %v1515_v39 = vld [vmem:[%s3853_s5 + $0x1e0] sm:$0xff]  ;;  %v1514_v6 = vld [vmem:[%s3853_s5 + $0x1d8] sm:$0xff] }
 0x2de   : > { %v2377_v7 = vpop.f32.mrf.mxu1  ;;  %v1499_v58 = vld [vmem:[%s3853_s5 + $0x160] sm:$0xff] }
 0x2df   : > { %v1426_v57 = vmax.f32 %v1383_v50, 0.0  ;;  %v1498_v50 = vld [vmem:[%s3853_s5 + $0x158] sm:$0xff]  ;;  %v1513_v7 = vld [vmem:[%s3853_s5 + $0x1d0] sm:$0xff] }
 0x2e0   : > { %v1387_v40 = vpop.f32.mrf.mxu1 }
 0x2e1   : > { %v1388_v41 = vadd.f32 %v1387_v40, %v1278_v53  ;;  %v1497_v40 = vld [vmem:[%s3853_s5 + $0x150] sm:$0xff] }
 0x2e2   : > { %v2380_v51 = vpop.f32.mrf.mxu1 }
 0x2e3   : > { %v1427_v19 = vmax.f32 %v1388_v41, 0.0  ;;  %v1496_v51 = vld [vmem:[%s3853_s5 + $0x148] sm:$0xff] }
 0x2e4   : > { %v1392_v43 = vpop.f32.mrf.mxu1  ;;  %v1508_v41 = vld [vmem:[%s3853_s5 + $0x1a8] sm:$0xff] }
 0x2e5   : > { %v1393_v18 = vadd.f32 %v1392_v43, %v1283_v44  ;;  %v1495_v43 = vld [vmem:[%s3853_s5 + $0x140] sm:$0xff] }
 0x2e6   : > { %v2383_v54 = vpop.f32.mrf.mxu1 }
 0x2e7   : > { %v1428_v42 = vmax.f32 %v1393_v18, 0.0  ;;  %v1494_v18 = vld [vmem:[%s3853_s5 + $0x138] sm:$0xff]  ;;  %v1493_v54 = vld [vmem:[%s3853_s5 + $0x130] sm:$0xff] }
 0x2e8   : > { %v1397_v45 = vpop.f32.mrf.mxu1 }
 0x2e9   : > { %v1398_v10 = vadd.f32 %v1397_v45, %v1288_v2  ;;  %v1492_v2 = vld [vmem:[%s3853_s5 + $0x128] sm:$0xff]  ;;  %v1507_v45 = vld [vmem:[%s3853_s5 + $0x1a0] sm:$0xff] }
 0x2ea   : > { %v2386_v15 = vpop.f32.mrf.mxu1 }
 0x2eb   : > { %v1429_v29 = vmax.f32 %v1398_v10, 0.0  ;;  %v1491_v10 = vld [vmem:[%s3853_s5 + $0x120] sm:$0xff]  ;;  %v1506_v15 = vld [vmem:[%s3853_s5 + $0x198] sm:$0xff] }
 0x2ec   : > { %v1402_v27 = vpop.f32.mrf.mxu1 }
 0x2ed   : > { %v2626_v28 = vpack.i.bf16 %v1427_v19, %v1429_v29  ;;  %v3596_v33 = vadd.f32 %v1402_v27, %v1293_v23  ;;  %v1490_v19 = vld [vmem:[%s3853_s5 + $0x118] sm:$0xff]  ;;  %v1505_v29 = vld [vmem:[%s3853_s5 + $0x190] sm:$0xff]  ;;  %v1504_v27 = vld [vmem:[%s3853_s5 + $0x188] sm:$0xff] }
 0x2ee   : > { %v2389_v62 = vpop.f32.mrf.mxu1  ;;  %v1489_v23 = vld [vmem:[%s3853_s5 + $0x110] sm:$0xff] }
 0x2ef   : > { %2627 = vrot.lane.b32.xlu1 %v2626_v28, %s2701_s21  ;;  %v1488_v28 = vld [vmem:[%s3853_s5 + $0x108] sm:$0xff] }
 0x2f0   : > { %v1407_v34 = vpop.f32.mrf.mxu1 }
 0x2f1   : > { %v1408_v13 = vadd.f32 %v1407_v34, %v1298_v63  ;;  %v1503_v34 = vld [vmem:[%s3853_s5 + $0x180] sm:$0xff] }
 0x2f2   : > { %v2392_v59 = vpop.f32.mrf.mxu1  ;;  %v1523_v63 = vld [vmem:[%s3853_s5 + $0x220] sm:$0xff] }
 0x2f3   : > { %v1431_v12 = vmax.f32 %v1408_v13, 0.0  ;;  %v1430_v59 = vmax.f32 %v3596_v33, 0.0  ;;  %v1524_v33 = vld [vmem:[%s3853_s5 + $0x228] sm:$0xff] }
 0x2f4   : > { %v1412_v38 = vpop.f32.mrf.mxu1  ;;  %v1520_v13 = vld [vmem:[%s3853_s5 + $0x208] sm:$0xff] }
 0x2f5   : > { %v1413_v4 = vadd.f32 %v1412_v38, %v1303_v55  ;;  %v1525_v38 = vld [vmem:[%s3853_s5 + $0x230] sm:$0xff] }
 0x2f6   : > { %v2395_v47 = vpop.f32.mrf.mxu1 }
 0x2f7   : > { %v1432_v44 = vmax.f32 %v1413_v4, 0.0  ;;  %v1522_v4 = vld [vmem:[%s3853_s5 + $0x218] sm:$0xff]  ;;  %v1521_v47 = vld [vmem:[%s3853_s5 + $0x210] sm:$0xff] }
 0x2f8   : > { %v1417_v24 = vpop.f32.mrf.mxu1 }
 0x2f9   : > { %v1418_v3 = vadd.f32 %v1417_v24, %v1308_v46  ;;  %v1519_v46 = vld [vmem:[%s3853_s5 + $0x200] sm:$0xff] }
 0x2fa   : > { %v2398_v14 = vpop.f32.mrf.mxu1 }
 0x2fb   : > { %v1433_v48 = vmax.f32 %v1418_v3, 0.0  ;;  %v1763_v3 = vld [vmem:[%s3855_s7 + $0x78] sm:$0xff]  ;;  %v1762_v14 = vld [vmem:[%s3855_s7 + $0x70] sm:$0xff] }
 0x2fc   : > { %v1422_v35 = vpop.f32.mrf.mxu1 }
 0x2fd   : > { %v2631_v16 = vpack.i.bf16 %v1431_v12, %v1433_v48  ;;  %v3599_v25 = vadd.f32 %v1422_v35, %v1313_v9  ;;  %v1761_v12 = vld [vmem:[%s3855_s7 + $0x68] sm:$0xff]  ;;  %v1760_v48 = vld [vmem:[%s3855_s7 + $0x60] sm:$0xff]  ;;  %v1759_v9 = vld [vmem:[%s3855_s7 + $0x58] sm:$0xff] }
 0x2fe   : > { %v2401_v30 = vpop.f32.mrf.mxu1  ;;  %v1758_v35 = vld [vmem:[%s3855_s7 + $0x50] sm:$0xff] }
 0x2ff   : > { %2632 = vrot.lane.b32.xlu0 %v2631_v16, %s2701_s21  ;;  %v1434_v24 = vmax.f32 %v3599_v25, 0.0  ;;  %v1757_v16 = vld [vmem:[%s3855_s7 + $0x48] sm:$0xff]  ;;  %v1756_v25 = vld [vmem:[%s3855_s7 + $0x40] sm:$0xff]  ;;  %v1755_v30 = vld [vmem:[%s3855_s7 + $0x38] sm:$0xff]  ;;  %s323_s21 = sand.u32 1, %s2688_s10  }
 0x300   : > { %s1919_s27 = sshll.u32 %s323_s21, 3  ;;  %s1843_s24 = scalar_lea.sflag [#allocation3], %s323_s21 }
 0x301   : > { %s325_s16 = scalar_lea.vmem [#allocation2], %s1919_s27  ;;  %s2642_s27 = scalar_lea.vmem %s2641_s13, 256 }
 0x302   : > { %s1856_s26 = sshll.u32 %s325_s16, 4  ;;  %s1857_s26 = int_to_ptr.vmem [resolvable:$true] %s1856_s26 }
 0x303   : > { %s2636_s25 = scalar_lea.vmem %s1857_s26, 128  ;;  %p2643_p0 = scmp.lt.s32.totalorder %s1857_s26, %s2641_s13 }
 0x304   : > { %p2637_p11 = scmp.ne.s32.totalorder %s1857_s26, %s2636_s25  ;;  %p2644_p1 = scmp.lt.s32.totalorder %s2642_s27, %s2636_s25 }
 0x306   : > { %p2638_p12 = pnand %p2637_p11, %p2792_p5  ;;  %p2645_p2 = por %p2644_p1, %p2643_p0 }
 0x308   : > { %p2639_p13 = pneg %p2638_p12 }
 0x30a   : > { %p2646_p3 = pnand %p2645_p2, %p2639_p13 }
 0x361   : > { %v2628_v49 = vpop.permute.xlu1 %2627 }
 0x362   : > { %v2630_v26 = vunpack.i.h.bf16 %v2628_v49  ;;  %v2629_v21 = vunpack.i.l.bf16 %v2628_v49  ;;  %v1754_v49 = vld [vmem:[%s3855_s7 + $0x30] sm:$0xff] }
 0x364   : > { %v1451_v11 = vsel %vm925_vm3, %v1426_v57, %v2630_v26  ;;  %v1452_v60 = vsel %vm925_vm3, %v1428_v42, %v2629_v21  ;;  %v1753_v57 = vld [vmem:[%s3855_s7 + $0x28] sm:$0xff]  ;;  %v1752_v42 = vld [vmem:[%s3855_s7 + $0x20] sm:$0xff]  ;;  %v1751_v26 = vld [vmem:[%s3855_s7 + $0x18] sm:$0xff] }
 0x365   : > { %1601 = vmatprep.mubr.f32.mxu1 %v1452_v60  ;;  %v1750_v21 = vld [vmem:[%s3855_s7 + $0x10] sm:$0xff]  ;;  %v1748_v60 = vld [vmem:[%s3855_s7] sm:$0xff] }
 0x366   : > { %1602 = vmatmul.mubr.f32.vlgmr.msra.gmra.mxu1 %v1451_v11  ;;  %v1749_v11 = vld [vmem:[%s3855_s7 + $0x8] sm:$0xff] }
 0x367   : > { %2150 = vmatpush3.msra.mxu1 %v1502_v0 }
 0x368   : > { %2151 = vmatprep.subr.mxu1 %v1517_v32 }
 0x369   : > { %2152 = vmatpush3.msra.mxu1 %v1501_v20 }
 0x36a   : > { %2153 = vmatprep.subr.mxu1 %v1516_v5 }
 0x36b   : > { %2154 = vmatpush3.msra.mxu1 %v1500_v8 }
 0x36c   : > { %2155 = vmatprep.subr.mxu1 %v1515_v39  ;;  %v1981_v39 = vld [vmem:[%s3854_s6] ss:$0 sm:$0xff] }
 0x36d   : > { %2156 = vmatpush3.msra.mxu1 %v1499_v58 }
 0x36e   : > { %2157 = vmatprep.subr.mxu1 %v1514_v6 }
 0x36f   : > { %2158 = vmatpush3.msra.mxu1 %v1498_v50 }
 0x370   : > { %2159 = vmatprep.subr.mxu1 %v1513_v7 }
 0x371   : > { %2160 = vmatpush3.msra.mxu1 %v1497_v40  ;;  %v2633_v22 = vpop.permute.xlu0 %2632 }
 0x372   : > { %v2634_v36 = vunpack.i.l.bf16 %v2633_v22  ;;  %2161 = vmatprep.subr.mxu1 %v1512_v17  ;;  %v2635_v62 = vunpack.i.h.bf16 %v2633_v22 }
 0x373   : > { %2162 = vmatpush3.msra.mxu1 %v1496_v51  ;;  %v1983_v51 = vld [vmem:[%s3856_s8] ss:$0 sm:$0xff] }
 0x374   : > { %2163 = vmatprep.subr.mxu1 %v1511_v31  ;;  %v1454_v53 = vsel %vm925_vm3, %v1432_v44, %v2634_v36  ;;  %v1453_v55 = vsel %vm925_vm3, %v1430_v59, %v2635_v62 }
 0x375   : > { %2164 = vmatpush3.msra.mxu1 %v1495_v43  ;;  %1671 = vmatprep.mubr.f32.mxu1 %v1454_v53 }
 0x376   : > { %2165 = vmatprep.subr.mxu1 %v1510_v52 }
 0x377   : > { %2166 = vmatpush3.msra.mxu1 %v1494_v18 }
 0x378   : > { %2167 = vmatprep.subr.mxu1 %v1509_v61 }
 0x379   : > { %2168 = vmatpush3.msra.mxu1 %v1493_v54 }
 0x37a   : > { %2169 = vmatprep.subr.mxu1 %v1508_v41 }
 0x37b   : > { %2170 = vmatpush3.msra.mxu1 %v1492_v2 }
 0x37c   : > { %2171 = vmatprep.subr.mxu1 %v1507_v45 }
 0x37d   : > { %2172 = vmatpush3.msra.mxu1 %v1491_v10 }
 0x37e   : > { %2173 = vmatprep.subr.mxu1 %v1506_v15 }
 0x37f   : > { %2174 = vmatpush3.msra.mxu1 %v1490_v19 }
 0x380   : > { %2175 = vmatprep.subr.mxu1 %v1505_v29 }
 0x381   : > { %2176 = vmatpush3.msra.mxu1 %v1489_v23 }
 0x382   : > { %2177 = vmatprep.subr.mxu1 %v1504_v27 }
 0x383   : > { %2178 = vmatpush3.msra.mxu1 %v1488_v28 }
 0x384   : > { %2179 = vmatprep.subr.mxu1 %v1503_v34 }
 0x385   : > { %2180 = vmatpush3.msra.mxu1 %v1487_v56 }
 0x386   : > { %1672 = vmatmul.mubr.f32.vlgmr.msra.gmra.mxu1 %v1453_v55  ;;  %2402 = vmatprep.subr.mxu1 %v2698_v1 }
 0x387   : > { %2403 = vmatpush3.msra.mxu1 %v1526_v37  ;;  %2418 = vmatprep.mubr.msk.f32.mxu1 %vm2699_vm0, %v2698_v1 }
 0x388   : > { %2404 = vmatprep.subr.mxu1 %v2698_v1 }
 0x389   : > { %2405 = vmatpush3.msra.mxu1 %v1525_v38 }
 0x38a   : > { %2406 = vmatprep.subr.mxu1 %v2698_v1 }
 0x38b   : > { %2407 = vmatpush3.msra.mxu1 %v1524_v33 }
 0x38c   : > { %2408 = vmatprep.subr.mxu1 %v2698_v1 }
 0x38d   : > { %2409 = vmatpush3.msra.mxu1 %v1523_v63 }
 0x38e   : > { %2410 = vmatprep.subr.mxu1 %v2698_v1 }
 0x38f   : > { %2411 = vmatpush3.msra.mxu1 %v1522_v4 }
 0x390   : > { %2412 = vmatprep.subr.mxu1 %v2698_v1 }
 0x391   : > { %2413 = vmatpush3.msra.mxu1 %v1521_v47 }
 0x392   : > { %2414 = vmatprep.subr.mxu1 %v2698_v1 }
 0x393   : > { %2415 = vmatpush3.msra.mxu1 %v1520_v13 }
 0x394   : > { %2416 = vmatprep.subr.mxu1 %v2698_v1 }
 0x395   : > { %2417 = vmatpush3.msra.mxu1 %v1519_v46 }
 0x396   : > { %2419 = vmatmul.mubr.msk.f32.vlgmr.msra.gmra.mxu1 %vm925_vm3, %v1434_v24  ;;  %2421 = vmatprep.subr.mxu1 %v2698_v1 }
 0x397   : > { %2453 = vmatprep.mubr.msk.f32.mxu1 %vm2699_vm0, %v2698_v1  ;;  %2422 = vmatpush3.msra.mxu1 %v1763_v3 }
 0x398   : > { %2423 = vmatprep.subr.mxu1 %v2698_v1 }
 0x399   : > { %2424 = vmatpush3.msra.mxu1 %v1762_v14 }
 0x39a   : > { %2425 = vmatprep.subr.mxu1 %v2698_v1 }
 0x39b   : > { %2426 = vmatpush3.msra.mxu1 %v1761_v12 }
 0x39c   : > { %2427 = vmatprep.subr.mxu1 %v2698_v1 }
 0x39d   : > { %2428 = vmatpush3.msra.mxu1 %v1760_v48 }
 0x39e   : > { %2429 = vmatprep.subr.mxu1 %v2698_v1 }
 0x39f   : > { %2430 = vmatpush3.msra.mxu1 %v1759_v9 }
 0x3a0   : > { %2431 = vmatprep.subr.mxu1 %v2698_v1 }
 0x3a1   : > { %2432 = vmatpush3.msra.mxu1 %v1758_v35 }
 0x3a2   : > { %2433 = vmatprep.subr.mxu1 %v2698_v1 }
 0x3a3   : > { %2434 = vmatpush3.msra.mxu1 %v1757_v16 }
 0x3a4   : > { %2435 = vmatprep.subr.mxu1 %v2698_v1 }
 0x3a5   : > { %2436 = vmatpush3.msra.mxu1 %v1756_v25 }
 0x3a6   : > { %2437 = vmatprep.subr.mxu1 %v2698_v1 }
 0x3a7   : > { %2438 = vmatpush3.msra.mxu1 %v1755_v30 }
 0x3a8   : > { %2439 = vmatprep.subr.mxu1 %v2698_v1 }
 0x3a9   : > { %2440 = vmatpush3.msra.mxu1 %v1754_v49 }
 0x3aa   : > { %2441 = vmatprep.subr.mxu1 %v2698_v1 }
 0x3ab   : > { %2442 = vmatpush3.msra.mxu1 %v1753_v57 }
 0x3ac   : > { %2443 = vmatprep.subr.mxu1 %v2698_v1 }
 0x3ad   : > { %2444 = vmatpush3.msra.mxu1 %v1752_v42 }
 0x3ae   : > { %2445 = vmatprep.subr.mxu1 %v2698_v1 }
 0x3af   : > { %2446 = vmatpush3.msra.mxu1 %v1751_v26 }
 0x3b0   : > { %2447 = vmatprep.subr.mxu1 %v2698_v1 }
 0x3b1   : > { %2448 = vmatpush3.msra.mxu1 %v1750_v21 }
 0x3b2   : > { %2449 = vmatprep.subr.mxu1 %v2698_v1 }
 0x3b3   : > { %2450 = vmatpush3.msra.mxu1 %v1749_v11 }
 0x3b4   : > { %2451 = vmatprep.subr.mxu1 %v2698_v1 }
 0x3b5   : > { %2452 = vmatpush3.msra.mxu1 %v1748_v60 }
 0x426   : > { %v2146_v0 = vpop.f32.mrf.mxu1 }
 0x428   : > { %v2147_v32 = vpop.f32.mrf.mxu1 }
 0x429   : > { %v2148_v8 = vadd.f32 %v2147_v32, %v2146_v0 }
 0x42b   : > { %v1604_v6 = vadd.f32 %v2148_v8, %v1981_v39 }
 0x446   : > { %v2181_v20 = vpop.f32.mrf.mxu1 }
 0x448   : > { %v2182_v5 = vpop.f32.mrf.mxu1 }
 0x449   : > { %v2183_v58 = vadd.f32 %v2182_v5, %v2181_v20 }
 0x44b   : > { %v1674_v50 = vadd.f32 %v2183_v58, %v1604_v6 }
 0x456   : > { %v1743_v1 = vpop.f32.mrf.mxu1 }
 0x457   : > { %v1744_v7 = vadd.f32 %v1743_v1, %v1674_v50 }
 0x458   : > { %v2420_v40 = vpop.f32.mrf.mxu1 }
 0x459   : > { %v1747_v17 = vmax.f32 %v1744_v7, 0.0 }
 0x45b   : > { %2454 = vmatmul.mubr.f32.vlgmr.msra.gmra.mxu1 %v1747_v17 }
 0x51b   : > { %v1837_v22 = vpop.f32.mrf.mxu1 }
 0x51c   : > { %v1838_v31 = vadd.f32 %v1983_v51, %v1837_v22 }
 0x51d   : > { %v2455_v44 = vpop.f32.mrf.mxu1 }
 0x51e   : > { %1841 = vst [vmem:[%s325_s16] sm:$0xff] %v1838_v31 }
 0x51f   : > { %2649 = shalt.err (!%p2646_p3)
}
 0x520   : > { %s2650_s29 = scalar_lea.hbm %s3813_s23, 128  ;;  %s2654_s16 = scalar_lea.hbm %s3857_s9, 256 }
 0x521   : > { %p2651_p4 = scmp.ne.s32.totalorder %s3813_s23, %s2650_s29  ;;  %p2655_p9 = scmp.lt.s32.totalorder %s3813_s23, %s3857_s9 }
 0x522   : > { %p2656_p10 = scmp.lt.s32.totalorder %s2654_s16, %s2650_s29 }
 0x523   : > { %p2652_p7 = pnand %p2651_p4, %p2792_p5 }
 0x524   : > { %p2657_p11 = por %p2656_p10, %p2655_p9 }
 0x525   : > { %p2653_p8 = pneg %p2652_p7 }
 0x527   : > { %p2658_p12 = pnand %p2657_p11, %p2653_p8 }
 0x529   : > { %2661 = shalt.err (!%p2658_p12)
}
 0x52a   : > { %2457 = dma.vmem_to_hbm [thread:$0]  (%p2792_p5), %s1857_s26, 128, %s3813_s23, %s1843_s24  }
 0x52b PF: > { %p2463_p13 = scmp.ge.s32.totalorder %s2696_s12, 2  ;;  %s1868_s25 = sand.u32 1, %s2684_s30  }
 0x52c   : > { %s1869_s28 = scalar_lea.sflag [#allocation3], %s1868_s25 }
 0x52d   : > { %p2460_p0 = pnand %p2463_p13, %p2796_p6 }
 0x52f   : > { %p2461_p1 = pneg %p2460_p0 }
 0x531   : > { %2679 = dma.done.wait (%p2461_p1), %s1869_s28, 128  }
 0x532   : > { %2681 = vsyncadd (%p2461_p1), %s1869_s28, 4294967168  ;;  %p19_p2 = scmp.ge.s32.totalorder %s2779_s15, 4   ;;  %s3860_s30 = smov %s2688_s10 }
 0x533   : > { %s3861_s10 = smov %s2692_s11  ;;  %s3862_s11 = smov %s2790_s18 }
 0x534   : > { %s3863_s12 = smov %s2779_s15  ;;  %21 = sbr.rel (!%p19_p2) target bundleno = 3 (0x3), region = 91 }
 0x539   :  { %1874 = vsyncpa [#allocation3], 1 }
 0x53a   :  { %1876 = vsyncpa [#allocation3 + $0x1], 1 }

</bundles_post_ra>
